<compile_context>
chip_gen: v7x
topology: tpu7x:2x2x1
jax: 0.10.0
libtpu: 0.0.40
codegen_flags: <defaults>
</compile_context>

<pallas_src>
import jax
import jax.numpy as jnp
from jax.experimental import pallas as pl
from jax.experimental.pallas import tpu as pltpu  # noqa: F401


def _round_up(n, m):
    return ((n + m - 1) // m) * m


# ----------------------------------------------------------------------------
# Single fused Pallas kernel for the whole forward pass.
# Operates on batch-padded, time-flattened 2-D slabs:
#   x2d (T*Bp, I) -> lstm_out (T*Bp, H), fc_out (T*Bp, Opad), score (T*Bp, Opad)
# ----------------------------------------------------------------------------
def _make_fused_forward(T, Bp, I, H, Opad, num_layers):
    TB = T * Bp

    def cell(gates, c_prev, first):
        # Whole-vreg transcendentals (gates is (Bp, 4H) = one (8,128) vreg):
        # 2 full-width EUP ops instead of 4 quarter-width ones.  The quarter
        # slices below are static lane slices; their relayout is XLU work that
        # overlaps the MXU/EUP critical path.  Gate math stays fp32 (v5e).
        sig = jax.nn.sigmoid(gates)
        th = jnp.tanh(gates)
        i_g = sig[:, 0 * H:1 * H]
        g_g = th[:, 2 * H:3 * H]
        o_g = sig[:, 3 * H:4 * H]
        if first:                       # h = c = 0 at t==0: skip f*c
            c_new = i_g * g_g
        else:
            f_g = sig[:, 1 * H:2 * H]
            c_new = f_g * c_prev + i_g * g_g
        h_new = o_g * jnp.tanh(c_new)
        return h_new, c_new

    def kernel(*refs):
        x_ref = refs[0]
        layer_refs = [(refs[1 + 3 * l], refs[2 + 3 * l], refs[3 + 3 * l])
                      for l in range(num_layers)]
        fc_w_ref = refs[1 + 3 * num_layers]
        fc_b_ref = refs[2 + 3 * num_layers]
        lstm_out_ref = refs[3 + 3 * num_layers]
        fc_out_ref = refs[4 + 3 * num_layers]
        score_ref = refs[5 + 3 * num_layers]

        # Layer 0: hoisted input projection + bias, one lane-dense fp32 matmul
        # off the serial chain (folds the bias broadcast once).
        wih0_ref, whh0_ref, b0_ref = layer_refs[0]
        proj0 = (jnp.dot(x_ref[...], wih0_ref[...],
                         preferred_element_type=jnp.float32)
                 + b0_ref[...])                                 # (TB, 4H)

        # Recurrent weights cast to bf16 ONCE (MXU-native on v5e/v6e/v7x);
        # fp32 MXU matmuls are multi-pass bf16 emulation, ~3x slower per step.
        whh0 = whh0_ref[...].astype(jnp.bfloat16)               # (H, 4H)
        up_wih = [layer_refs[l][0][...].astype(jnp.bfloat16) for l in range(1, num_layers)]
        up_whh = [layer_refs[l][1][...].astype(jnp.bfloat16) for l in range(1, num_layers)]
        up_b = [layer_refs[l][2][...] for l in range(1, num_layers)]

        zero = jnp.zeros((Bp, H), jnp.float32)
        h = [zero] * num_layers
        c = [zero] * num_layers
        top_h = []                      # per-step final-layer h, stored once at the end

        # Fully unrolled, layer-interleaved recurrence: everything is one basic
        # block, so the scheduler overlaps layer-0 step t+1 with layer-l step t
        # (they are data-independent).  Upper layers use two small independent
        # dots (W_ih, W_hh) rather than a lane-concat fold: they are OFF the
        # critical path, so the extra MXU pop hides under layer-0's chain while
        # avoiding a sub-128-lane concatenate on the hot path.
        for t in range(T):
            # ---- layer 0: the serial critical chain ----
            if t == 0:
                gates0 = proj0[0:Bp, :]                          # h(-1)=0: skip h@W_hh
            else:
                gates0 = (jnp.dot(h[0].astype(jnp.bfloat16), whh0,
                                  preferred_element_type=jnp.float32)
                          + proj0[t * Bp:(t + 1) * Bp, :])       # static 8-aligned slice
            h[0], c[0] = cell(gates0, c[0], first=(t == 0))

            # ---- upper layers, interleaved with layer 0's next step ----
            for l in range(1, num_layers):
                g = (jnp.dot(h[l - 1].astype(jnp.bfloat16), up_wih[l - 1],
                             preferred_element_type=jnp.float32)
                     + up_b[l - 1])
                if t > 0:                                        # h_l(-1)=0 at t==0
                    g = g + jnp.dot(h[l].astype(jnp.bfloat16), up_whh[l - 1],
                                    preferred_element_type=jnp.float32)
                h[l], c[l] = cell(g, c[l], first=(t == 0))

            top_h.append(h[num_layers - 1])

        # Single epilogue store of the hidden sequence (no per-step masked
        # (8,32) stores, no VMEM store->load dependency on the critical path).
        lstm_slab = jnp.concatenate(top_h, axis=0)               # (TB, H)
        lstm_out_ref[...] = lstm_slab

        # Dropout(p=0.3) is identity in eval/inference mode.
        # Fused fc + sigmoid epilogue; fc weights are lane-padded to Opad=128 in
        # the wrapper so both stores below are unmasked lane-dense stores.
        logits = (jnp.dot(lstm_slab, fc_w_ref[...],
                          preferred_element_type=jnp.float32)
                  + fc_b_ref[...])                               # (TB, Opad)
        fc_out_ref[...] = logits
        score_ref[...] = jax.nn.sigmoid(logits)

    in_specs = [pl.BlockSpec((TB, I), lambda: (0, 0))]
    for l in range(num_layers):
        in_sz = I if l == 0 else H
        in_specs += [
            pl.BlockSpec((in_sz, 4 * H), lambda: (0, 0)),
            pl.BlockSpec((H, 4 * H), lambda: (0, 0)),
            pl.BlockSpec((1, 4 * H), lambda: (0, 0)),
        ]
    in_specs += [
        pl.BlockSpec((H, Opad), lambda: (0, 0)),
        pl.BlockSpec((1, Opad), lambda: (0, 0)),
    ]
    out_specs = (
        pl.BlockSpec((TB, H), lambda: (0, 0)),
        pl.BlockSpec((TB, Opad), lambda: (0, 0)),
        pl.BlockSpec((TB, Opad), lambda: (0, 0)),
    )
    return pl.pallas_call(
        kernel,
        out_shape=(
            jax.ShapeDtypeStruct((TB, H), jnp.float32),
            jax.ShapeDtypeStruct((TB, Opad), jnp.float32),
            jax.ShapeDtypeStruct((TB, Opad), jnp.float32),
        ),
        in_specs=in_specs,
        out_specs=out_specs,
    )


# ----------------------------------------------------------------------------
# Parameter init (deterministic, PyTorch-style uniform(-1/sqrt(H), 1/sqrt(H)))
# Weights stored transposed for the x @ W form; gate order i, f, g, o;
# b = b_ih + b_hh pre-summed (equivalent to PyTorch).
# ----------------------------------------------------------------------------
def init_params(key, input_size, hidden_size, output_size, num_layers):
    params = {"layers": []}
    bound = 1.0 / jnp.sqrt(hidden_size)
    for layer in range(num_layers):
        in_sz = input_size if layer == 0 else hidden_size
        key, k1, k2, k3, k4 = jax.random.split(key, 5)
        w_ih = jax.random.uniform(k1, (in_sz, 4 * hidden_size), jnp.float32, -bound, bound)
        w_hh = jax.random.uniform(k2, (hidden_size, 4 * hidden_size), jnp.float32, -bound, bound)
        b_ih = jax.random.uniform(k3, (1, 4 * hidden_size), jnp.float32, -bound, bound)
        b_hh = jax.random.uniform(k4, (1, 4 * hidden_size), jnp.float32, -bound, bound)
        params["layers"].append((w_ih, w_hh, b_ih + b_hh))
    key, k5, k6 = jax.random.split(key, 3)
    fc_bound = 1.0 / jnp.sqrt(hidden_size)
    params["fc_w"] = jax.random.uniform(k5, (hidden_size, output_size), jnp.float32,
                                        -fc_bound, fc_bound)
    params["fc_b"] = jax.random.uniform(k6, (1, output_size), jnp.float32,
                                        -fc_bound, fc_bound)
    return params


# ----------------------------------------------------------------------------
# Full forward matching LSTM.forward(x) -> (score, [lstm_out, fc_out])
# ----------------------------------------------------------------------------
def lstm_module_forward(x, params):
    T, B, I = x.shape
    num_layers = len(params["layers"])
    H = params["layers"][0][1].shape[0]
    O = params["fc_w"].shape[1]

    # Pad batch to a sublane multiple (8) so every per-step tile is aligned,
    # and pad the fc output dim to a lane multiple (128) so fc/score stores
    # are lane-dense full-vreg stores.
    Bp = _round_up(max(B, 8), 8)
    Opad = _round_up(max(O, 128), 128)

    xp = jnp.pad(x, ((0, 0), (0, Bp - B), (0, 0)))
    x2d = xp.reshape(T * Bp, I)
    fc_w_pad = jnp.pad(params["fc_w"], ((0, 0), (0, Opad - O)))
    fc_b_pad = jnp.pad(params["fc_b"], ((0, 0), (0, Opad - O)))

    flat_weights = []
    for (w_ih, w_hh, b) in params["layers"]:
        flat_weights += [w_ih, w_hh, b]

    fwd = _make_fused_forward(T, Bp, I, H, Opad, num_layers)
    lstm2d, fc2d, score2d = fwd(x2d, *flat_weights, fc_w_pad, fc_b_pad)

    lstm_out = lstm2d.reshape(T, Bp, H)[:, :B, :]
    fc_out = fc2d.reshape(T, Bp, Opad)[:, :B, :O]
    score = score2d.reshape(T, Bp, Opad)[:, :B, :O]
    return score, [lstm_out, fc_out]


# ----------------------------------------------------------------------------
# Pure-JAX references.
#   recurrent_dtype=float32  -> true fp32 reference (PyTorch-equivalent math).
#   recurrent_dtype=bfloat16 -> mirrors the kernel's mixed precision exactly
#     (bf16 MXU inputs on the recurrence and on upper-layer input projections,
#      fp32 accumulation and fp32 everywhere else) -> tight bug-catching check.
# ----------------------------------------------------------------------------
def _reference_forward(x, params, recurrent_dtype=jnp.float32):
    T, B, _ = x.shape
    hp = jax.lax.Precision.HIGHEST
    h_seq = x
    for layer, (w_ih, w_hh, b) in enumerate(params["layers"]):
        H = w_hh.shape[0]
        in_dtype = jnp.float32 if layer == 0 else recurrent_dtype
        h = jnp.zeros((B, H), jnp.float32)
        c = jnp.zeros((B, H), jnp.float32)
        outs = []
        for t in range(T):
            gates = (jnp.dot(h_seq[t].astype(in_dtype), w_ih.astype(in_dtype),
                             preferred_element_type=jnp.float32, precision=hp)
                     + jnp.dot(h.astype(recurrent_dtype), w_hh.astype(recurrent_dtype),
                               preferred_element_type=jnp.float32, precision=hp)
                     + b)
            i_g = jax.nn.sigmoid(gates[:, 0 * H:1 * H])
            f_g = jax.nn.sigmoid(gates[:, 1 * H:2 * H])
            g_g = jnp.tanh(gates[:, 2 * H:3 * H])
            o_g = jax.nn.sigmoid(gates[:, 3 * H:4 * H])
            c = f_g * c + i_g * g_g
            h = o_g * jnp.tanh(c)
            outs.append(h)
        h_seq = jnp.stack(outs, axis=0)
    logits = jnp.dot(h_seq, params["fc_w"], precision=hp) + params["fc_b"]
    return jax.nn.sigmoid(logits), [h_seq, logits]


if __name__ == "__main__":
    input_size = 16
    hidden_size = 32
    output_size = 4
    num_layers = 2
    seq_len = 8
    batch = 2

    key = jax.random.PRNGKey(0)
    key, kx = jax.random.split(key)
    x = jax.random.normal(kx, (seq_len, batch, input_size), jnp.float32)
    params = init_params(key, input_size, hidden_size, output_size, num_layers)

    fwd = jax.jit(lstm_module_forward)
    score, per_out = fwd(x, params)
    jax.block_until_ready(score)
    jax.block_until_ready(per_out[0])
    jax.block_until_ready(per_out[1])

    lstm_out, fc_out = per_out
    assert score.shape == (seq_len, batch, output_size)
    assert lstm_out.shape == (seq_len, batch, hidden_size)
    assert fc_out.shape == (seq_len, batch, output_size)
    assert bool(jnp.all((score >= 0.0) & (score <= 1.0)))

    # Tight check vs a reference using the SAME mixed precision as the kernel
    # (catches real bugs, not precision loss).
    mref_score, (mref_lstm, mref_fc) = _reference_forward(x, params, jnp.bfloat16)
    assert float(jnp.max(jnp.abs(score - mref_score))) < 5e-3
    assert float(jnp.max(jnp.abs(lstm_out - mref_lstm))) < 5e-3
    assert float(jnp.max(jnp.abs(fc_out - mref_fc))) < 5e-3

    # Loose check vs the full-fp32 reference: bounds the deliberate bf16
    # precision loss on the recurrent matmuls.
    fref_score, (fref_lstm, fref_fc) = _reference_forward(x, params, jnp.float32)
    assert float(jnp.max(jnp.abs(score - fref_score))) < 5e-2
    assert float(jnp.max(jnp.abs(lstm_out - fref_lstm))) < 5e-2
    assert float(jnp.max(jnp.abs(fc_out - fref_fc))) < 5e-2

    print("KERNEL_OK")
</pallas_src>

<mosaic_0001>
module attributes {stable_mosaic.version = 11 : i64} {
  func.func @kernel(%arg0: memref<64x16xf32, #tpu.memory_space<vmem>>, %arg1: memref<16x128xf32, #tpu.memory_space<vmem>>, %arg2: memref<32x128xf32, #tpu.memory_space<vmem>>, %arg3: memref<1x128xf32, #tpu.memory_space<vmem>>, %arg4: memref<32x128xf32, #tpu.memory_space<vmem>>, %arg5: memref<32x128xf32, #tpu.memory_space<vmem>>, %arg6: memref<1x128xf32, #tpu.memory_space<vmem>>, %arg7: memref<32x128xf32, #tpu.memory_space<vmem>>, %arg8: memref<1x128xf32, #tpu.memory_space<vmem>>, %arg9: memref<64x32xf32, #tpu.memory_space<vmem>>, %arg10: memref<64x128xf32, #tpu.memory_space<vmem>>, %arg11: memref<64x128xf32, #tpu.memory_space<vmem>>) attributes {dimension_semantics = [], scalar_prefetch = 0 : i64, scratch_operands = 0 : i64, tpu.core_type = #tpu.core_type<tc>} {
    %c0 = arith.constant 0 : index
    %c0_0 = arith.constant 0 : index
    %0 = vector.load %arg0[%c0, %c0_0] : memref<64x16xf32, #tpu.memory_space<vmem>>, vector<64x16xf32>
    %c0_1 = arith.constant 0 : index
    %c0_2 = arith.constant 0 : index
    %1 = vector.load %arg1[%c0_1, %c0_2] : memref<16x128xf32, #tpu.memory_space<vmem>>, vector<16x128xf32>
    %cst = arith.constant dense<0.000000e+00> : vector<64x128xf32>
    %2 = tpu.matmul %0, %1, %cst {dimension_numbers = #tpu.dot_dimension_numbers<[1], [0], [0], [1], [0, 0, 1, 1], [], []>} : vector<64x16xf32>, vector<16x128xf32>, vector<64x128xf32> -> vector<64x128xf32>
    %c0_3 = arith.constant 0 : index
    %c0_4 = arith.constant 0 : index
    %3 = vector.load %arg3[%c0_3, %c0_4] : memref<1x128xf32, #tpu.memory_space<vmem>>, vector<1x128xf32>
    %4 = vector.broadcast %3 : vector<1x128xf32> to vector<64x128xf32>
    %5 = arith.addf %2, %4 : vector<64x128xf32>
    %c0_5 = arith.constant 0 : index
    %c0_6 = arith.constant 0 : index
    %6 = vector.load %arg2[%c0_5, %c0_6] : memref<32x128xf32, #tpu.memory_space<vmem>>, vector<32x128xf32>
    %7 = arith.truncf %6 : vector<32x128xf32> to vector<32x128xbf16>
    %c0_7 = arith.constant 0 : index
    %c0_8 = arith.constant 0 : index
    %8 = vector.load %arg4[%c0_7, %c0_8] : memref<32x128xf32, #tpu.memory_space<vmem>>, vector<32x128xf32>
    %9 = arith.truncf %8 : vector<32x128xf32> to vector<32x128xbf16>
    %c0_9 = arith.constant 0 : index
    %c0_10 = arith.constant 0 : index
    %10 = vector.load %arg5[%c0_9, %c0_10] : memref<32x128xf32, #tpu.memory_space<vmem>>, vector<32x128xf32>
    %11 = arith.truncf %10 : vector<32x128xf32> to vector<32x128xbf16>
    %c0_11 = arith.constant 0 : index
    %c0_12 = arith.constant 0 : index
    %12 = vector.load %arg6[%c0_11, %c0_12] : memref<1x128xf32, #tpu.memory_space<vmem>>, vector<1x128xf32>
    %13 = vector.extract_strided_slice %5 {offsets = [0, 0], sizes = [8, 128], strides = [1, 1]} : vector<64x128xf32> to vector<8x128xf32>
    %14 = arith.negf %13 : vector<8x128xf32>
    %15 = math.exp %14 : vector<8x128xf32>
    %cst_13 = arith.constant 1.000000e+00 : f32
    %16 = vector.broadcast %cst_13 : f32 to vector<8x128xf32>
    %17 = arith.addf %16, %15 : vector<8x128xf32>
    %18 = arith.divf %16, %17 : vector<8x128xf32>
    %19 = math.tanh %13 : vector<8x128xf32>
    %20 = vector.extract_strided_slice %18 {offsets = [0, 0], sizes = [8, 32], strides = [1, 1]} : vector<8x128xf32> to vector<8x32xf32>
    %21 = vector.extract_strided_slice %19 {offsets = [0, 64], sizes = [8, 32], strides = [1, 1]} : vector<8x128xf32> to vector<8x32xf32>
    %22 = vector.extract_strided_slice %18 {offsets = [0, 96], sizes = [8, 32], strides = [1, 1]} : vector<8x128xf32> to vector<8x32xf32>
    %23 = arith.mulf %20, %21 : vector<8x32xf32>
    %24 = math.tanh %23 : vector<8x32xf32>
    %25 = arith.mulf %22, %24 : vector<8x32xf32>
    %26 = arith.truncf %25 : vector<8x32xf32> to vector<8x32xbf16>
    %cst_14 = arith.constant dense<0.000000e+00> : vector<8x128xf32>
    %27 = tpu.matmul %26, %9, %cst_14 {dimension_numbers = #tpu.dot_dimension_numbers<[1], [0], [0], [1], [0, 0, 1, 1], [], []>} : vector<8x32xbf16>, vector<32x128xbf16>, vector<8x128xf32> -> vector<8x128xf32>
    %28 = vector.broadcast %12 : vector<1x128xf32> to vector<8x128xf32>
    %29 = arith.addf %27, %28 : vector<8x128xf32>
    %30 = arith.negf %29 : vector<8x128xf32>
    %31 = math.exp %30 : vector<8x128xf32>
    %cst_15 = arith.constant 1.000000e+00 : f32
    %32 = vector.broadcast %cst_15 : f32 to vector<8x128xf32>
    %33 = arith.addf %32, %31 : vector<8x128xf32>
    %34 = arith.divf %32, %33 : vector<8x128xf32>
    %35 = math.tanh %29 : vector<8x128xf32>
    %36 = vector.extract_strided_slice %34 {offsets = [0, 0], sizes = [8, 32], strides = [1, 1]} : vector<8x128xf32> to vector<8x32xf32>
    %37 = vector.extract_strided_slice %35 {offsets = [0, 64], sizes = [8, 32], strides = [1, 1]} : vector<8x128xf32> to vector<8x32xf32>
    %38 = vector.extract_strided_slice %34 {offsets = [0, 96], sizes = [8, 32], strides = [1, 1]} : vector<8x128xf32> to vector<8x32xf32>
    %39 = arith.mulf %36, %37 : vector<8x32xf32>
    %40 = math.tanh %39 : vector<8x32xf32>
    %41 = arith.mulf %38, %40 : vector<8x32xf32>
    %42 = arith.truncf %25 : vector<8x32xf32> to vector<8x32xbf16>
    %cst_16 = arith.constant dense<0.000000e+00> : vector<8x128xf32>
    %43 = tpu.matmul %42, %7, %cst_16 {dimension_numbers = #tpu.dot_dimension_numbers<[1], [0], [0], [1], [0, 0, 1, 1], [], []>} : vector<8x32xbf16>, vector<32x128xbf16>, vector<8x128xf32> -> vector<8x128xf32>
    %44 = vector.extract_strided_slice %5 {offsets = [8, 0], sizes = [8, 128], strides = [1, 1]} : vector<64x128xf32> to vector<8x128xf32>
    %45 = arith.addf %43, %44 : vector<8x128xf32>
    %46 = arith.negf %45 : vector<8x128xf32>
    %47 = math.exp %46 : vector<8x128xf32>
    %cst_17 = arith.constant 1.000000e+00 : f32
    %48 = vector.broadcast %cst_17 : f32 to vector<8x128xf32>
    %49 = arith.addf %48, %47 : vector<8x128xf32>
    %50 = arith.divf %48, %49 : vector<8x128xf32>
    %51 = math.tanh %45 : vector<8x128xf32>
    %52 = vector.extract_strided_slice %50 {offsets = [0, 0], sizes = [8, 32], strides = [1, 1]} : vector<8x128xf32> to vector<8x32xf32>
    %53 = vector.extract_strided_slice %51 {offsets = [0, 64], sizes = [8, 32], strides = [1, 1]} : vector<8x128xf32> to vector<8x32xf32>
    %54 = vector.extract_strided_slice %50 {offsets = [0, 96], sizes = [8, 32], strides = [1, 1]} : vector<8x128xf32> to vector<8x32xf32>
    %55 = vector.extract_strided_slice %50 {offsets = [0, 32], sizes = [8, 32], strides = [1, 1]} : vector<8x128xf32> to vector<8x32xf32>
    %56 = arith.mulf %55, %23 : vector<8x32xf32>
    %57 = arith.mulf %52, %53 : vector<8x32xf32>
    %58 = arith.addf %56, %57 : vector<8x32xf32>
    %59 = math.tanh %58 : vector<8x32xf32>
    %60 = arith.mulf %54, %59 : vector<8x32xf32>
    %61 = arith.truncf %60 : vector<8x32xf32> to vector<8x32xbf16>
    %cst_18 = arith.constant dense<0.000000e+00> : vector<8x128xf32>
    %62 = tpu.matmul %61, %9, %cst_18 {dimension_numbers = #tpu.dot_dimension_numbers<[1], [0], [0], [1], [0, 0, 1, 1], [], []>} : vector<8x32xbf16>, vector<32x128xbf16>, vector<8x128xf32> -> vector<8x128xf32>
    %63 = vector.broadcast %12 : vector<1x128xf32> to vector<8x128xf32>
    %64 = arith.addf %62, %63 : vector<8x128xf32>
    %65 = arith.truncf %41 : vector<8x32xf32> to vector<8x32xbf16>
    %cst_19 = arith.constant dense<0.000000e+00> : vector<8x128xf32>
    %66 = tpu.matmul %65, %11, %cst_19 {dimension_numbers = #tpu.dot_dimension_numbers<[1], [0], [0], [1], [0, 0, 1, 1], [], []>} : vector<8x32xbf16>, vector<32x128xbf16>, vector<8x128xf32> -> vector<8x128xf32>
    %67 = arith.addf %64, %66 : vector<8x128xf32>
    %68 = arith.negf %67 : vector<8x128xf32>
    %69 = math.exp %68 : vector<8x128xf32>
    %cst_20 = arith.constant 1.000000e+00 : f32
    %70 = vector.broadcast %cst_20 : f32 to vector<8x128xf32>
    %71 = arith.addf %70, %69 : vector<8x128xf32>
    %72 = arith.divf %70, %71 : vector<8x128xf32>
    %73 = math.tanh %67 : vector<8x128xf32>
    %74 = vector.extract_strided_slice %72 {offsets = [0, 0], sizes = [8, 32], strides = [1, 1]} : vector<8x128xf32> to vector<8x32xf32>
    %75 = vector.extract_strided_slice %73 {offsets = [0, 64], sizes = [8, 32], strides = [1, 1]} : vector<8x128xf32> to vector<8x32xf32>
    %76 = vector.extract_strided_slice %72 {offsets = [0, 96], sizes = [8, 32], strides = [1, 1]} : vector<8x128xf32> to vector<8x32xf32>
    %77 = vector.extract_strided_slice %72 {offsets = [0, 32], sizes = [8, 32], strides = [1, 1]} : vector<8x128xf32> to vector<8x32xf32>
    %78 = arith.mulf %77, %39 : vector<8x32xf32>
    %79 = arith.mulf %74, %75 : vector<8x32xf32>
    %80 = arith.addf %78, %79 : vector<8x32xf32>
    %81 = math.tanh %80 : vector<8x32xf32>
    %82 = arith.mulf %76, %81 : vector<8x32xf32>
    %83 = arith.truncf %60 : vector<8x32xf32> to vector<8x32xbf16>
    %cst_21 = arith.constant dense<0.000000e+00> : vector<8x128xf32>
    %84 = tpu.matmul %83, %7, %cst_21 {dimension_numbers = #tpu.dot_dimension_numbers<[1], [0], [0], [1], [0, 0, 1, 1], [], []>} : vector<8x32xbf16>, vector<32x128xbf16>, vector<8x128xf32> -> vector<8x128xf32>
    %85 = vector.extract_strided_slice %5 {offsets = [16, 0], sizes = [8, 128], strides = [1, 1]} : vector<64x128xf32> to vector<8x128xf32>
    %86 = arith.addf %84, %85 : vector<8x128xf32>
    %87 = arith.negf %86 : vector<8x128xf32>
    %88 = math.exp %87 : vector<8x128xf32>
    %cst_22 = arith.constant 1.000000e+00 : f32
    %89 = vector.broadcast %cst_22 : f32 to vector<8x128xf32>
    %90 = arith.addf %89, %88 : vector<8x128xf32>
    %91 = arith.divf %89, %90 : vector<8x128xf32>
    %92 = math.tanh %86 : vector<8x128xf32>
    %93 = vector.extract_strided_slice %91 {offsets = [0, 0], sizes = [8, 32], strides = [1, 1]} : vector<8x128xf32> to vector<8x32xf32>
    %94 = vector.extract_strided_slice %92 {offsets = [0, 64], sizes = [8, 32], strides = [1, 1]} : vector<8x128xf32> to vector<8x32xf32>
    %95 = vector.extract_strided_slice %91 {offsets = [0, 96], sizes = [8, 32], strides = [1, 1]} : vector<8x128xf32> to vector<8x32xf32>
    %96 = vector.extract_strided_slice %91 {offsets = [0, 32], sizes = [8, 32], strides = [1, 1]} : vector<8x128xf32> to vector<8x32xf32>
    %97 = arith.mulf %96, %58 : vector<8x32xf32>
    %98 = arith.mulf %93, %94 : vector<8x32xf32>
    %99 = arith.addf %97, %98 : vector<8x32xf32>
    %100 = math.tanh %99 : vector<8x32xf32>
    %101 = arith.mulf %95, %100 : vector<8x32xf32>
    %102 = arith.truncf %101 : vector<8x32xf32> to vector<8x32xbf16>
    %cst_23 = arith.constant dense<0.000000e+00> : vector<8x128xf32>
    %103 = tpu.matmul %102, %9, %cst_23 {dimension_numbers = #tpu.dot_dimension_numbers<[1], [0], [0], [1], [0, 0, 1, 1], [], []>} : vector<8x32xbf16>, vector<32x128xbf16>, vector<8x128xf32> -> vector<8x128xf32>
    %104 = vector.broadcast %12 : vector<1x128xf32> to vector<8x128xf32>
    %105 = arith.addf %103, %104 : vector<8x128xf32>
    %106 = arith.truncf %82 : vector<8x32xf32> to vector<8x32xbf16>
    %cst_24 = arith.constant dense<0.000000e+00> : vector<8x128xf32>
    %107 = tpu.matmul %106, %11, %cst_24 {dimension_numbers = #tpu.dot_dimension_numbers<[1], [0], [0], [1], [0, 0, 1, 1], [], []>} : vector<8x32xbf16>, vector<32x128xbf16>, vector<8x128xf32> -> vector<8x128xf32>
    %108 = arith.addf %105, %107 : vector<8x128xf32>
    %109 = arith.negf %108 : vector<8x128xf32>
    %110 = math.exp %109 : vector<8x128xf32>
    %cst_25 = arith.constant 1.000000e+00 : f32
    %111 = vector.broadcast %cst_25 : f32 to vector<8x128xf32>
    %112 = arith.addf %111, %110 : vector<8x128xf32>
    %113 = arith.divf %111, %112 : vector<8x128xf32>
    %114 = math.tanh %108 : vector<8x128xf32>
    %115 = vector.extract_strided_slice %113 {offsets = [0, 0], sizes = [8, 32], strides = [1, 1]} : vector<8x128xf32> to vector<8x32xf32>
    %116 = vector.extract_strided_slice %114 {offsets = [0, 64], sizes = [8, 32], strides = [1, 1]} : vector<8x128xf32> to vector<8x32xf32>
    %117 = vector.extract_strided_slice %113 {offsets = [0, 96], sizes = [8, 32], strides = [1, 1]} : vector<8x128xf32> to vector<8x32xf32>
    %118 = vector.extract_strided_slice %113 {offsets = [0, 32], sizes = [8, 32], strides = [1, 1]} : vector<8x128xf32> to vector<8x32xf32>
    %119 = arith.mulf %118, %80 : vector<8x32xf32>
    %120 = arith.mulf %115, %116 : vector<8x32xf32>
    %121 = arith.addf %119, %120 : vector<8x32xf32>
    %122 = math.tanh %121 : vector<8x32xf32>
    %123 = arith.mulf %117, %122 : vector<8x32xf32>
    %124 = arith.truncf %101 : vector<8x32xf32> to vector<8x32xbf16>
    %cst_26 = arith.constant dense<0.000000e+00> : vector<8x128xf32>
    %125 = tpu.matmul %124, %7, %cst_26 {dimension_numbers = #tpu.dot_dimension_numbers<[1], [0], [0], [1], [0, 0, 1, 1], [], []>} : vector<8x32xbf16>, vector<32x128xbf16>, vector<8x128xf32> -> vector<8x128xf32>
    %126 = vector.extract_strided_slice %5 {offsets = [24, 0], sizes = [8, 128], strides = [1, 1]} : vector<64x128xf32> to vector<8x128xf32>
    %127 = arith.addf %125, %126 : vector<8x128xf32>
    %128 = arith.negf %127 : vector<8x128xf32>
    %129 = math.exp %128 : vector<8x128xf32>
    %cst_27 = arith.constant 1.000000e+00 : f32
    %130 = vector.broadcast %cst_27 : f32 to vector<8x128xf32>
    %131 = arith.addf %130, %129 : vector<8x128xf32>
    %132 = arith.divf %130, %131 : vector<8x128xf32>
    %133 = math.tanh %127 : vector<8x128xf32>
    %134 = vector.extract_strided_slice %132 {offsets = [0, 0], sizes = [8, 32], strides = [1, 1]} : vector<8x128xf32> to vector<8x32xf32>
    %135 = vector.extract_strided_slice %133 {offsets = [0, 64], sizes = [8, 32], strides = [1, 1]} : vector<8x128xf32> to vector<8x32xf32>
    %136 = vector.extract_strided_slice %132 {offsets = [0, 96], sizes = [8, 32], strides = [1, 1]} : vector<8x128xf32> to vector<8x32xf32>
    %137 = vector.extract_strided_slice %132 {offsets = [0, 32], sizes = [8, 32], strides = [1, 1]} : vector<8x128xf32> to vector<8x32xf32>
    %138 = arith.mulf %137, %99 : vector<8x32xf32>
    %139 = arith.mulf %134, %135 : vector<8x32xf32>
    %140 = arith.addf %138, %139 : vector<8x32xf32>
    %141 = math.tanh %140 : vector<8x32xf32>
    %142 = arith.mulf %136, %141 : vector<8x32xf32>
    %143 = arith.truncf %142 : vector<8x32xf32> to vector<8x32xbf16>
    %cst_28 = arith.constant dense<0.000000e+00> : vector<8x128xf32>
    %144 = tpu.matmul %143, %9, %cst_28 {dimension_numbers = #tpu.dot_dimension_numbers<[1], [0], [0], [1], [0, 0, 1, 1], [], []>} : vector<8x32xbf16>, vector<32x128xbf16>, vector<8x128xf32> -> vector<8x128xf32>
    %145 = vector.broadcast %12 : vector<1x128xf32> to vector<8x128xf32>
    %146 = arith.addf %144, %145 : vector<8x128xf32>
    %147 = arith.truncf %123 : vector<8x32xf32> to vector<8x32xbf16>
    %cst_29 = arith.constant dense<0.000000e+00> : vector<8x128xf32>
    %148 = tpu.matmul %147, %11, %cst_29 {dimension_numbers = #tpu.dot_dimension_numbers<[1], [0], [0], [1], [0, 0, 1, 1], [], []>} : vector<8x32xbf16>, vector<32x128xbf16>, vector<8x128xf32> -> vector<8x128xf32>
    %149 = arith.addf %146, %148 : vector<8x128xf32>
    %150 = arith.negf %149 : vector<8x128xf32>
    %151 = math.exp %150 : vector<8x128xf32>
    %cst_30 = arith.constant 1.000000e+00 : f32
    %152 = vector.broadcast %cst_30 : f32 to vector<8x128xf32>
    %153 = arith.addf %152, %151 : vector<8x128xf32>
    %154 = arith.divf %152, %153 : vector<8x128xf32>
    %155 = math.tanh %149 : vector<8x128xf32>
    %156 = vector.extract_strided_slice %154 {offsets = [0, 0], sizes = [8, 32], strides = [1, 1]} : vector<8x128xf32> to vector<8x32xf32>
    %157 = vector.extract_strided_slice %155 {offsets = [0, 64], sizes = [8, 32], strides = [1, 1]} : vector<8x128xf32> to vector<8x32xf32>
    %158 = vector.extract_strided_slice %154 {offsets = [0, 96], sizes = [8, 32], strides = [1, 1]} : vector<8x128xf32> to vector<8x32xf32>
    %159 = vector.extract_strided_slice %154 {offsets = [0, 32], sizes = [8, 32], strides = [1, 1]} : vector<8x128xf32> to vector<8x32xf32>
    %160 = arith.mulf %159, %121 : vector<8x32xf32>
    %161 = arith.mulf %156, %157 : vector<8x32xf32>
    %162 = arith.addf %160, %161 : vector<8x32xf32>
    %163 = math.tanh %162 : vector<8x32xf32>
    %164 = arith.mulf %158, %163 : vector<8x32xf32>
    %165 = arith.truncf %142 : vector<8x32xf32> to vector<8x32xbf16>
    %cst_31 = arith.constant dense<0.000000e+00> : vector<8x128xf32>
    %166 = tpu.matmul %165, %7, %cst_31 {dimension_numbers = #tpu.dot_dimension_numbers<[1], [0], [0], [1], [0, 0, 1, 1], [], []>} : vector<8x32xbf16>, vector<32x128xbf16>, vector<8x128xf32> -> vector<8x128xf32>
    %167 = vector.extract_strided_slice %5 {offsets = [32, 0], sizes = [8, 128], strides = [1, 1]} : vector<64x128xf32> to vector<8x128xf32>
    %168 = arith.addf %166, %167 : vector<8x128xf32>
    %169 = arith.negf %168 : vector<8x128xf32>
    %170 = math.exp %169 : vector<8x128xf32>
    %cst_32 = arith.constant 1.000000e+00 : f32
    %171 = vector.broadcast %cst_32 : f32 to vector<8x128xf32>
    %172 = arith.addf %171, %170 : vector<8x128xf32>
    %173 = arith.divf %171, %172 : vector<8x128xf32>
    %174 = math.tanh %168 : vector<8x128xf32>
    %175 = vector.extract_strided_slice %173 {offsets = [0, 0], sizes = [8, 32], strides = [1, 1]} : vector<8x128xf32> to vector<8x32xf32>
    %176 = vector.extract_strided_slice %174 {offsets = [0, 64], sizes = [8, 32], strides = [1, 1]} : vector<8x128xf32> to vector<8x32xf32>
    %177 = vector.extract_strided_slice %173 {offsets = [0, 96], sizes = [8, 32], strides = [1, 1]} : vector<8x128xf32> to vector<8x32xf32>
    %178 = vector.extract_strided_slice %173 {offsets = [0, 32], sizes = [8, 32], strides = [1, 1]} : vector<8x128xf32> to vector<8x32xf32>
    %179 = arith.mulf %178, %140 : vector<8x32xf32>
    %180 = arith.mulf %175, %176 : vector<8x32xf32>
    %181 = arith.addf %179, %180 : vector<8x32xf32>
    %182 = math.tanh %181 : vector<8x32xf32>
    %183 = arith.mulf %177, %182 : vector<8x32xf32>
    %184 = arith.truncf %183 : vector<8x32xf32> to vector<8x32xbf16>
    %cst_33 = arith.constant dense<0.000000e+00> : vector<8x128xf32>
    %185 = tpu.matmul %184, %9, %cst_33 {dimension_numbers = #tpu.dot_dimension_numbers<[1], [0], [0], [1], [0, 0, 1, 1], [], []>} : vector<8x32xbf16>, vector<32x128xbf16>, vector<8x128xf32> -> vector<8x128xf32>
    %186 = vector.broadcast %12 : vector<1x128xf32> to vector<8x128xf32>
    %187 = arith.addf %185, %186 : vector<8x128xf32>
    %188 = arith.truncf %164 : vector<8x32xf32> to vector<8x32xbf16>
    %cst_34 = arith.constant dense<0.000000e+00> : vector<8x128xf32>
    %189 = tpu.matmul %188, %11, %cst_34 {dimension_numbers = #tpu.dot_dimension_numbers<[1], [0], [0], [1], [0, 0, 1, 1], [], []>} : vector<8x32xbf16>, vector<32x128xbf16>, vector<8x128xf32> -> vector<8x128xf32>
    %190 = arith.addf %187, %189 : vector<8x128xf32>
    %191 = arith.negf %190 : vector<8x128xf32>
    %192 = math.exp %191 : vector<8x128xf32>
    %cst_35 = arith.constant 1.000000e+00 : f32
    %193 = vector.broadcast %cst_35 : f32 to vector<8x128xf32>
    %194 = arith.addf %193, %192 : vector<8x128xf32>
    %195 = arith.divf %193, %194 : vector<8x128xf32>
    %196 = math.tanh %190 : vector<8x128xf32>
    %197 = vector.extract_strided_slice %195 {offsets = [0, 0], sizes = [8, 32], strides = [1, 1]} : vector<8x128xf32> to vector<8x32xf32>
    %198 = vector.extract_strided_slice %196 {offsets = [0, 64], sizes = [8, 32], strides = [1, 1]} : vector<8x128xf32> to vector<8x32xf32>
    %199 = vector.extract_strided_slice %195 {offsets = [0, 96], sizes = [8, 32], strides = [1, 1]} : vector<8x128xf32> to vector<8x32xf32>
    %200 = vector.extract_strided_slice %195 {offsets = [0, 32], sizes = [8, 32], strides = [1, 1]} : vector<8x128xf32> to vector<8x32xf32>
    %201 = arith.mulf %200, %162 : vector<8x32xf32>
    %202 = arith.mulf %197, %198 : vector<8x32xf32>
    %203 = arith.addf %201, %202 : vector<8x32xf32>
    %204 = math.tanh %203 : vector<8x32xf32>
    %205 = arith.mulf %199, %204 : vector<8x32xf32>
    %206 = arith.truncf %183 : vector<8x32xf32> to vector<8x32xbf16>
    %cst_36 = arith.constant dense<0.000000e+00> : vector<8x128xf32>
    %207 = tpu.matmul %206, %7, %cst_36 {dimension_numbers = #tpu.dot_dimension_numbers<[1], [0], [0], [1], [0, 0, 1, 1], [], []>} : vector<8x32xbf16>, vector<32x128xbf16>, vector<8x128xf32> -> vector<8x128xf32>
    %208 = vector.extract_strided_slice %5 {offsets = [40, 0], sizes = [8, 128], strides = [1, 1]} : vector<64x128xf32> to vector<8x128xf32>
    %209 = arith.addf %207, %208 : vector<8x128xf32>
    %210 = arith.negf %209 : vector<8x128xf32>
    %211 = math.exp %210 : vector<8x128xf32>
    %cst_37 = arith.constant 1.000000e+00 : f32
    %212 = vector.broadcast %cst_37 : f32 to vector<8x128xf32>
    %213 = arith.addf %212, %211 : vector<8x128xf32>
    %214 = arith.divf %212, %213 : vector<8x128xf32>
    %215 = math.tanh %209 : vector<8x128xf32>
    %216 = vector.extract_strided_slice %214 {offsets = [0, 0], sizes = [8, 32], strides = [1, 1]} : vector<8x128xf32> to vector<8x32xf32>
    %217 = vector.extract_strided_slice %215 {offsets = [0, 64], sizes = [8, 32], strides = [1, 1]} : vector<8x128xf32> to vector<8x32xf32>
    %218 = vector.extract_strided_slice %214 {offsets = [0, 96], sizes = [8, 32], strides = [1, 1]} : vector<8x128xf32> to vector<8x32xf32>
    %219 = vector.extract_strided_slice %214 {offsets = [0, 32], sizes = [8, 32], strides = [1, 1]} : vector<8x128xf32> to vector<8x32xf32>
    %220 = arith.mulf %219, %181 : vector<8x32xf32>
    %221 = arith.mulf %216, %217 : vector<8x32xf32>
    %222 = arith.addf %220, %221 : vector<8x32xf32>
    %223 = math.tanh %222 : vector<8x32xf32>
    %224 = arith.mulf %218, %223 : vector<8x32xf32>
    %225 = arith.truncf %224 : vector<8x32xf32> to vector<8x32xbf16>
    %cst_38 = arith.constant dense<0.000000e+00> : vector<8x128xf32>
    %226 = tpu.matmul %225, %9, %cst_38 {dimension_numbers = #tpu.dot_dimension_numbers<[1], [0], [0], [1], [0, 0, 1, 1], [], []>} : vector<8x32xbf16>, vector<32x128xbf16>, vector<8x128xf32> -> vector<8x128xf32>
    %227 = vector.broadcast %12 : vector<1x128xf32> to vector<8x128xf32>
    %228 = arith.addf %226, %227 : vector<8x128xf32>
    %229 = arith.truncf %205 : vector<8x32xf32> to vector<8x32xbf16>
    %cst_39 = arith.constant dense<0.000000e+00> : vector<8x128xf32>
    %230 = tpu.matmul %229, %11, %cst_39 {dimension_numbers = #tpu.dot_dimension_numbers<[1], [0], [0], [1], [0, 0, 1, 1], [], []>} : vector<8x32xbf16>, vector<32x128xbf16>, vector<8x128xf32> -> vector<8x128xf32>
    %231 = arith.addf %228, %230 : vector<8x128xf32>
    %232 = arith.negf %231 : vector<8x128xf32>
    %233 = math.exp %232 : vector<8x128xf32>
    %cst_40 = arith.constant 1.000000e+00 : f32
    %234 = vector.broadcast %cst_40 : f32 to vector<8x128xf32>
    %235 = arith.addf %234, %233 : vector<8x128xf32>
    %236 = arith.divf %234, %235 : vector<8x128xf32>
    %237 = math.tanh %231 : vector<8x128xf32>
    %238 = vector.extract_strided_slice %236 {offsets = [0, 0], sizes = [8, 32], strides = [1, 1]} : vector<8x128xf32> to vector<8x32xf32>
    %239 = vector.extract_strided_slice %237 {offsets = [0, 64], sizes = [8, 32], strides = [1, 1]} : vector<8x128xf32> to vector<8x32xf32>
    %240 = vector.extract_strided_slice %236 {offsets = [0, 96], sizes = [8, 32], strides = [1, 1]} : vector<8x128xf32> to vector<8x32xf32>
    %241 = vector.extract_strided_slice %236 {offsets = [0, 32], sizes = [8, 32], strides = [1, 1]} : vector<8x128xf32> to vector<8x32xf32>
    %242 = arith.mulf %241, %203 : vector<8x32xf32>
    %243 = arith.mulf %238, %239 : vector<8x32xf32>
    %244 = arith.addf %242, %243 : vector<8x32xf32>
    %245 = math.tanh %244 : vector<8x32xf32>
    %246 = arith.mulf %240, %245 : vector<8x32xf32>
    %247 = arith.truncf %224 : vector<8x32xf32> to vector<8x32xbf16>
    %cst_41 = arith.constant dense<0.000000e+00> : vector<8x128xf32>
    %248 = tpu.matmul %247, %7, %cst_41 {dimension_numbers = #tpu.dot_dimension_numbers<[1], [0], [0], [1], [0, 0, 1, 1], [], []>} : vector<8x32xbf16>, vector<32x128xbf16>, vector<8x128xf32> -> vector<8x128xf32>
    %249 = vector.extract_strided_slice %5 {offsets = [48, 0], sizes = [8, 128], strides = [1, 1]} : vector<64x128xf32> to vector<8x128xf32>
    %250 = arith.addf %248, %249 : vector<8x128xf32>
    %251 = arith.negf %250 : vector<8x128xf32>
    %252 = math.exp %251 : vector<8x128xf32>
    %cst_42 = arith.constant 1.000000e+00 : f32
    %253 = vector.broadcast %cst_42 : f32 to vector<8x128xf32>
    %254 = arith.addf %253, %252 : vector<8x128xf32>
    %255 = arith.divf %253, %254 : vector<8x128xf32>
    %256 = math.tanh %250 : vector<8x128xf32>
    %257 = vector.extract_strided_slice %255 {offsets = [0, 0], sizes = [8, 32], strides = [1, 1]} : vector<8x128xf32> to vector<8x32xf32>
    %258 = vector.extract_strided_slice %256 {offsets = [0, 64], sizes = [8, 32], strides = [1, 1]} : vector<8x128xf32> to vector<8x32xf32>
    %259 = vector.extract_strided_slice %255 {offsets = [0, 96], sizes = [8, 32], strides = [1, 1]} : vector<8x128xf32> to vector<8x32xf32>
    %260 = vector.extract_strided_slice %255 {offsets = [0, 32], sizes = [8, 32], strides = [1, 1]} : vector<8x128xf32> to vector<8x32xf32>
    %261 = arith.mulf %260, %222 : vector<8x32xf32>
    %262 = arith.mulf %257, %258 : vector<8x32xf32>
    %263 = arith.addf %261, %262 : vector<8x32xf32>
    %264 = math.tanh %263 : vector<8x32xf32>
    %265 = arith.mulf %259, %264 : vector<8x32xf32>
    %266 = arith.truncf %265 : vector<8x32xf32> to vector<8x32xbf16>
    %cst_43 = arith.constant dense<0.000000e+00> : vector<8x128xf32>
    %267 = tpu.matmul %266, %9, %cst_43 {dimension_numbers = #tpu.dot_dimension_numbers<[1], [0], [0], [1], [0, 0, 1, 1], [], []>} : vector<8x32xbf16>, vector<32x128xbf16>, vector<8x128xf32> -> vector<8x128xf32>
    %268 = vector.broadcast %12 : vector<1x128xf32> to vector<8x128xf32>
    %269 = arith.addf %267, %268 : vector<8x128xf32>
    %270 = arith.truncf %246 : vector<8x32xf32> to vector<8x32xbf16>
    %cst_44 = arith.constant dense<0.000000e+00> : vector<8x128xf32>
    %271 = tpu.matmul %270, %11, %cst_44 {dimension_numbers = #tpu.dot_dimension_numbers<[1], [0], [0], [1], [0, 0, 1, 1], [], []>} : vector<8x32xbf16>, vector<32x128xbf16>, vector<8x128xf32> -> vector<8x128xf32>
    %272 = arith.addf %269, %271 : vector<8x128xf32>
    %273 = arith.negf %272 : vector<8x128xf32>
    %274 = math.exp %273 : vector<8x128xf32>
    %cst_45 = arith.constant 1.000000e+00 : f32
    %275 = vector.broadcast %cst_45 : f32 to vector<8x128xf32>
    %276 = arith.addf %275, %274 : vector<8x128xf32>
    %277 = arith.divf %275, %276 : vector<8x128xf32>
    %278 = math.tanh %272 : vector<8x128xf32>
    %279 = vector.extract_strided_slice %277 {offsets = [0, 0], sizes = [8, 32], strides = [1, 1]} : vector<8x128xf32> to vector<8x32xf32>
    %280 = vector.extract_strided_slice %278 {offsets = [0, 64], sizes = [8, 32], strides = [1, 1]} : vector<8x128xf32> to vector<8x32xf32>
    %281 = vector.extract_strided_slice %277 {offsets = [0, 96], sizes = [8, 32], strides = [1, 1]} : vector<8x128xf32> to vector<8x32xf32>
    %282 = vector.extract_strided_slice %277 {offsets = [0, 32], sizes = [8, 32], strides = [1, 1]} : vector<8x128xf32> to vector<8x32xf32>
    %283 = arith.mulf %282, %244 : vector<8x32xf32>
    %284 = arith.mulf %279, %280 : vector<8x32xf32>
    %285 = arith.addf %283, %284 : vector<8x32xf32>
    %286 = math.tanh %285 : vector<8x32xf32>
    %287 = arith.mulf %281, %286 : vector<8x32xf32>
    %288 = arith.truncf %265 : vector<8x32xf32> to vector<8x32xbf16>
    %cst_46 = arith.constant dense<0.000000e+00> : vector<8x128xf32>
    %289 = tpu.matmul %288, %7, %cst_46 {dimension_numbers = #tpu.dot_dimension_numbers<[1], [0], [0], [1], [0, 0, 1, 1], [], []>} : vector<8x32xbf16>, vector<32x128xbf16>, vector<8x128xf32> -> vector<8x128xf32>
    %290 = vector.extract_strided_slice %5 {offsets = [56, 0], sizes = [8, 128], strides = [1, 1]} : vector<64x128xf32> to vector<8x128xf32>
    %291 = arith.addf %289, %290 : vector<8x128xf32>
    %292 = arith.negf %291 : vector<8x128xf32>
    %293 = math.exp %292 : vector<8x128xf32>
    %cst_47 = arith.constant 1.000000e+00 : f32
    %294 = vector.broadcast %cst_47 : f32 to vector<8x128xf32>
    %295 = arith.addf %294, %293 : vector<8x128xf32>
    %296 = arith.divf %294, %295 : vector<8x128xf32>
    %297 = math.tanh %291 : vector<8x128xf32>
    %298 = vector.extract_strided_slice %296 {offsets = [0, 0], sizes = [8, 32], strides = [1, 1]} : vector<8x128xf32> to vector<8x32xf32>
    %299 = vector.extract_strided_slice %297 {offsets = [0, 64], sizes = [8, 32], strides = [1, 1]} : vector<8x128xf32> to vector<8x32xf32>
    %300 = vector.extract_strided_slice %296 {offsets = [0, 96], sizes = [8, 32], strides = [1, 1]} : vector<8x128xf32> to vector<8x32xf32>
    %301 = vector.extract_strided_slice %296 {offsets = [0, 32], sizes = [8, 32], strides = [1, 1]} : vector<8x128xf32> to vector<8x32xf32>
    %302 = arith.mulf %301, %263 : vector<8x32xf32>
    %303 = arith.mulf %298, %299 : vector<8x32xf32>
    %304 = arith.addf %302, %303 : vector<8x32xf32>
    %305 = math.tanh %304 : vector<8x32xf32>
    %306 = arith.mulf %300, %305 : vector<8x32xf32>
    %307 = arith.truncf %306 : vector<8x32xf32> to vector<8x32xbf16>
    %cst_48 = arith.constant dense<0.000000e+00> : vector<8x128xf32>
    %308 = tpu.matmul %307, %9, %cst_48 {dimension_numbers = #tpu.dot_dimension_numbers<[1], [0], [0], [1], [0, 0, 1, 1], [], []>} : vector<8x32xbf16>, vector<32x128xbf16>, vector<8x128xf32> -> vector<8x128xf32>
    %309 = vector.broadcast %12 : vector<1x128xf32> to vector<8x128xf32>
    %310 = arith.addf %308, %309 : vector<8x128xf32>
    %311 = arith.truncf %287 : vector<8x32xf32> to vector<8x32xbf16>
    %cst_49 = arith.constant dense<0.000000e+00> : vector<8x128xf32>
    %312 = tpu.matmul %311, %11, %cst_49 {dimension_numbers = #tpu.dot_dimension_numbers<[1], [0], [0], [1], [0, 0, 1, 1], [], []>} : vector<8x32xbf16>, vector<32x128xbf16>, vector<8x128xf32> -> vector<8x128xf32>
    %313 = arith.addf %310, %312 : vector<8x128xf32>
    %314 = arith.negf %313 : vector<8x128xf32>
    %315 = math.exp %314 : vector<8x128xf32>
    %cst_50 = arith.constant 1.000000e+00 : f32
    %316 = vector.broadcast %cst_50 : f32 to vector<8x128xf32>
    %317 = arith.addf %316, %315 : vector<8x128xf32>
    %318 = arith.divf %316, %317 : vector<8x128xf32>
    %319 = math.tanh %313 : vector<8x128xf32>
    %320 = vector.extract_strided_slice %318 {offsets = [0, 0], sizes = [8, 32], strides = [1, 1]} : vector<8x128xf32> to vector<8x32xf32>
    %321 = vector.extract_strided_slice %319 {offsets = [0, 64], sizes = [8, 32], strides = [1, 1]} : vector<8x128xf32> to vector<8x32xf32>
    %322 = vector.extract_strided_slice %318 {offsets = [0, 96], sizes = [8, 32], strides = [1, 1]} : vector<8x128xf32> to vector<8x32xf32>
    %323 = vector.extract_strided_slice %318 {offsets = [0, 32], sizes = [8, 32], strides = [1, 1]} : vector<8x128xf32> to vector<8x32xf32>
    %324 = arith.mulf %323, %285 : vector<8x32xf32>
    %325 = arith.mulf %320, %321 : vector<8x32xf32>
    %326 = arith.addf %324, %325 : vector<8x32xf32>
    %327 = math.tanh %326 : vector<8x32xf32>
    %328 = arith.mulf %322, %327 : vector<8x32xf32>
    %329 = tpu.concatenate %41, %82, %123, %164, %205, %246, %287, %328 in 0 : vector<8x32xf32>, vector<8x32xf32>, vector<8x32xf32>, vector<8x32xf32>, vector<8x32xf32>, vector<8x32xf32>, vector<8x32xf32>, vector<8x32xf32> -> vector<64x32xf32>
    %c0_51 = arith.constant 0 : index
    %c0_52 = arith.constant 0 : index
    %330 = vector.load %arg9[%c0_51, %c0_52] : memref<64x32xf32, #tpu.memory_space<vmem>>, vector<64x32xf32>
    tpu.vector_store %arg9[%c0_51, %c0_52], %329 {strides = array<i32>} : memref<64x32xf32, #tpu.memory_space<vmem>>, vector<64x32xf32>,
    %c0_53 = arith.constant 0 : index
    %c0_54 = arith.constant 0 : index
    %331 = vector.load %arg7[%c0_53, %c0_54] : memref<32x128xf32, #tpu.memory_space<vmem>>, vector<32x128xf32>
    %cst_55 = arith.constant dense<0.000000e+00> : vector<64x128xf32>
    %332 = tpu.matmul %329, %331, %cst_55 {dimension_numbers = #tpu.dot_dimension_numbers<[1], [0], [0], [1], [0, 0, 1, 1], [], []>} : vector<64x32xf32>, vector<32x128xf32>, vector<64x128xf32> -> vector<64x128xf32>
    %c0_56 = arith.constant 0 : index
    %c0_57 = arith.constant 0 : index
    %333 = vector.load %arg8[%c0_56, %c0_57] : memref<1x128xf32, #tpu.memory_space<vmem>>, vector<1x128xf32>
    %334 = vector.broadcast %333 : vector<1x128xf32> to vector<64x128xf32>
    %335 = arith.addf %332, %334 : vector<64x128xf32>
    %c0_58 = arith.constant 0 : index
    %c0_59 = arith.constant 0 : index
    %336 = vector.load %arg10[%c0_58, %c0_59] : memref<64x128xf32, #tpu.memory_space<vmem>>, vector<64x128xf32>
    tpu.vector_store %arg10[%c0_58, %c0_59], %335 {strides = array<i32>} : memref<64x128xf32, #tpu.memory_space<vmem>>, vector<64x128xf32>,
    %337 = arith.negf %335 : vector<64x128xf32>
    %338 = math.exp %337 : vector<64x128xf32>
    %cst_60 = arith.constant 1.000000e+00 : f32
    %339 = vector.broadcast %cst_60 : f32 to vector<64x128xf32>
    %340 = arith.addf %339, %338 : vector<64x128xf32>
    %341 = arith.divf %339, %340 : vector<64x128xf32>
    %c0_61 = arith.constant 0 : index
    %c0_62 = arith.constant 0 : index
    %342 = vector.load %arg11[%c0_61, %c0_62] : memref<64x128xf32, #tpu.memory_space<vmem>>, vector<64x128xf32>
    tpu.vector_store %arg11[%c0_61, %c0_62], %341 {strides = array<i32>} : memref<64x128xf32, #tpu.memory_space<vmem>>, vector<64x128xf32>,
    return
  }
}

</mosaic_0001>

<bundles_post_ra>
// kernel: lstm_module_forward.1
= control target key start
LH: loop header
LB: loop body
LE: loop exit
PB: predicated region body
PF: predicated region fallthrough
CT: control target
= control target key end

     0   :  { %vm53_vm0 = vcmask 130048   ;;  %v2409_v16 = vmov 0.0   ;;  %vm2410_vm1 = vmmov 0   ;;  %s2411_s16 = smov 96   ;;  %vm230_vm2 = vcmask 261120   ;;  %s3023_s1 = inlined_call_operand.vmem [shape: f32[16,128], index: 1, kind: input, shape index: {}]   ;;  %s3024_s0 = inlined_call_operand.vmem [shape: f32[64,16], index: 0, kind: input, shape index: {}]   ;;  %s3025_s3 = inlined_call_operand.vmem [shape: f32[1,128], index: 3, kind: input, shape index: {}]   ;;  %s3026_s4 = inlined_call_operand.vmem [shape: f32[32,128], index: 4, kind: input, shape index: {}]   ;;  %s3027_s2 = inlined_call_operand.vmem [shape: f32[32,128], index: 2, kind: input, shape index: {}]   ;;  %s3028_s6 = inlined_call_operand.vmem [shape: f32[1,128], index: 6, kind: input, shape index: {}]   ;;  %s3029_s5 = inlined_call_operand.vmem [shape: f32[32,128], index: 5, kind: input, shape index: {}]   ;;  %s3030_s7 = inlined_call_operand.vmem [shape: f32[32,128], index: 7, kind: input, shape index: {}]   ;;  %s3031_s9 = inlined_call_operand.vmem [shape: f32[64,32], index: 9, kind: output, shape index: {0}]   ;;  %s3032_s8 = inlined_call_operand.vmem [shape: f32[1,128], index: 8, kind: input, shape index: {}]   ;;  %s3033_s10 = inlined_call_operand.vmem [shape: f32[64,128], index: 10, kind: output, shape index: {1}]   ;;  %s3034_s11 = inlined_call_operand.vmem [shape: f32[64,128], index: 11, kind: output, shape index: {2}]  }
   0x1   :  { %v44_v0 = vld [vmem:[%s3023_s1] sm:$0xff]  ;;  %v45_v1 = vld [vmem:[%s3023_s1 + $0x8] sm:$0xff]  ;;  %s2408_s1 = smov 64   ;;  %1998 = vmatprep.subr.bf16.mxu1 %v2409_v16  ;;  %v191_v19 = vld [vmem:[%s3026_s4 + $0x10] sm:$0xff]  ;;  %2002 = vmatprep.mubr.msk.bf16.mxu1 %vm2410_vm1, %v2409_v16 }
   0x2   :  { %v36_v2 = vld [vmem:[%s3024_s0] sm:$0xff]  ;;  %v2194_v3 = vpack.c.bf16 %v45_v1, %v44_v0  ;;  %v37_v4 = vld [vmem:[%s3024_s0 + $0x8] sm:$0xff]  ;;  %v192_v21 = vld [vmem:[%s3026_s4 + $0x18] sm:$0xff] }
   0x3   :  { %1986 = vmatprep.mubr.msk.f32.mxu0 %vm53_vm0, %v36_v2  ;;  %v2490_v5 = vld [vmem:[%s3025_s3] ss:$0 sm:$0xff]  ;;  %v190_v18 = vld [vmem:[%s3026_s4 + $0x8] sm:$0xff]  ;;  %v2515_v22 = vpack.c.bf16 %v192_v21, %v191_v19  ;;  %v185_v30 = vld [vmem:[%s3027_s2 + $0x10] sm:$0xff] }
   0x4   :  { %2195 = vmatprep.subr.bf16.mxu0 %v2194_v3  ;;  %v189_v17 = vld [vmem:[%s3026_s4] sm:$0xff]  ;;  %s2412_s4 = smov 32   ;;  %v184_v28 = vld [vmem:[%s3027_s2 + $0x8] sm:$0xff]  ;;  %v186_v31 = vld [vmem:[%s3027_s2 + $0x18] sm:$0xff] }
   0x5   :  { %2197 = vmatpush3.bf16.msra.mxu0 %v2194_v3  ;;  %v2508_v20 = vpack.c.bf16 %v190_v18, %v189_v17  ;;  %v183_v27 = vld [vmem:[%s3027_s2] sm:$0xff]  ;;  %v2543_v33 = vpack.c.bf16 %v186_v31, %v185_v30  ;;  %v38_v3 = vld [vmem:[%s3024_s0 + $0x10] sm:$0xff] }
   0x6   :  { %2014 = vmatprep.subr.bf16.mxu0 %v2409_v16  ;;  %v2533_v29 = vpack.c.bf16 %v184_v28, %v183_v27  ;;  %v2560_v34 = vld [vmem:[%s3028_s6] ss:$0 sm:$0xff]  ;;  %v197_v27 = vld [vmem:[%s3029_s5 + $0x10] sm:$0xff]  ;;  %v198_v28 = vld [vmem:[%s3029_s5 + $0x18] sm:$0xff] }
   0x7   :  { %1999 = vmatpush3.bf16.msra.mxu1 %v2508_v20  ;;  %v2635_v31 = vpack.c.bf16 %v198_v28, %v197_v27 }
   0x8   :  { %1987 = vmatmul.mubr.msk.f32.vlgmr.msra.gmra.mrb[0].mxu0 %vm53_vm0, %v37_v4  ;;  %2000 = vmatprep.subr.bf16.mxu1 %v2409_v16  ;;  %v39_v4 = vld [vmem:[%s3024_s0 + $0x18] sm:$0xff] }
   0x9   :  { %2015 = vmatpush3.bf16.msra.mxu0 %v2508_v20  ;;  %1989 = vmatprep.mubr.msk.f32.mxu0 %vm53_vm0, %v38_v3 }
   0xa   :  { %2016 = vmatprep.subr.bf16.mxu0 %v2409_v16 }
   0xb   :  { %2001 = vmatpush3.bf16.msra.mxu1 %v2515_v22 }
   0xc   :  { %2006 = vmatprep.subr.bf16.mxu1 %v2409_v16  ;;  %1990 = vmatmul.mubr.msk.f32.gmra.mrb[2].mxu0 %vm53_vm0, %v39_v4 }
   0xd   :  { %2017 = vmatpush3.bf16.msra.mxu0 %v2515_v22 }
   0xe   :  { %2022 = vmatprep.subr.bf16.mxu0 %v2409_v16 }
  0xdb   :  { %v2492_v6 = vpop.f32.mrb[0].mxu0 }
  0xdc   :  { %v144_v7 = vpop.f32.mrb[1].mxu0  ;;  %v150_v40 = vadd.f32 %v2492_v6, %v2490_v5  ;;  %v40_v6 = vld [vmem:[%s3024_s0 + $0x20] sm:$0xff] }
  0xdd   :  { %v145_v8 = vadd.f32 %v2490_v5, %v144_v7  ;;  %1992 = vmatprep.mubr.msk.f32.mxu0 %vm53_vm0, %v40_v6 }
  0xdf   :  { %2246 = vtanh.f32 %v145_v8  ;;  %v1838_v10 = vmul.f32 -1.442695, %v145_v8  ;;  %v41_v8 = vld [vmem:[%s3024_s0 + $0x28] sm:$0xff] }
  0xe0   :  { %1993 = vmatmul.mubr.msk.f32.gmra.mrb[4].mxu0 %vm53_vm0, %v41_v8 }
  0xe1   :  { %2248 = vpow2.f32 %v1838_v10  ;;  %v43_v10 = vld [vmem:[%s3024_s0 + $0x38] sm:$0xff] }
  0xe9   :  { %v2247_v9 = vpop.eup %2246 }
  0xea   :  { %210 = vrot.lane.b32.xlu0 %v2247_v9, %s2408_s1  ;;  %v42_v9 = vld [vmem:[%s3024_s0 + $0x30] sm:$0xff] }
  0xeb   :  { %v2249_v11 = vpop.eup %2248  ;;  %1995 = vmatprep.mubr.msk.f32.mxu0 %vm53_vm0, %v42_v9 }
  0xec   :  { %v205_v12 = vadd.f32 1.0, %v2249_v11  ;;  %1996 = vmatmul.mubr.msk.f32.gmra.mrb[6].mxu0 %vm53_vm0, %v43_v10 }
  0xed   :  { %2018 = vmatprep.mubr.msk.bf16.mxu0 %vm2410_vm1, %v2409_v16 }
  0xee   :  { %2250 = vrcp.f32 %v205_v12 }
  0xf8   :  { %v2251_v13 = vpop.eup %2250 }
 0x15c   :  { %v211_v14 = vpop.permute.xlu0 %210 }
 0x15d   :  { %v213_v15 = vmul.f32 %v2251_v13, %v211_v14 }
 0x15f   :  { %2252 = vtanh.f32 %v213_v15 }
 0x169   :  { %v2253_v23 = vpop.eup %2252 }
 0x16a   :  { %216 = vrot.lane.b32.xlu0 %v2253_v23, %s2411_s16 }
 0x16e   :  { %340 = vrot.lane.b32.xlu0 %v213_v15, %s2412_s4  ;;  %v2608_v15 = vpop.f32.mrb[2].mxu0 }
 0x16f   :  { %v154_v17 = vpop.f32.mrb[3].mxu0 }
 0x1b3   :  { %v2610_v18 = vpop.f32.mrb[4].mxu0 }
 0x1b4   :  { %v2612_v19 = vpop.f32.mrb[5].mxu0 }
 0x1bf   :  { %v2614_v21 = vpop.f32.mrb[6].mxu0 }
 0x1c0   :  { %v2616_v23 = vpop.f32.mrb[7].mxu0 }
 0x1dc   :  { %v217_v24 = vpop.permute.xlu0 %216 }
 0x1dd   :  { %v219_v25 = vmul.f32 %v2251_v13, %v217_v24  ;;  %v195_v24 = vld [vmem:[%s3029_s5] sm:$0xff] }
 0x1df   :  { %v220_v26 = vpack.c.bf16 %v219_v25, %v219_v25  ;;  %v196_v25 = vld [vmem:[%s3029_s5 + $0x8] sm:$0xff] }
 0x1e0   :  { %v341_v54 = vpop.permute.xlu0 %340 }
 0x1e1   :  { %228 = vrot.lane.b32.xlu1 %v220_v26, %s2412_s4  ;;  %v2624_v26 = vpack.c.bf16 %v196_v25, %v195_v24 }
 0x253   :  { %v229_v32 = vpop.permute.xlu1 %228 }
 0x254   :  { %2003 = vmatmul.mubr.msk.bf16.vlgmr.msra.gmra.mrb[0].mxu1 %vm230_vm2, %v229_v32 }
 0x255   :  { %2007 = vmatpush3.bf16.msra.mxu1 %v2533_v29  ;;  %2010 = vmatprep.mubr.msk.bf16.mxu1 %vm2410_vm1, %v2409_v16 }
 0x256   :  { %2008 = vmatprep.subr.bf16.mxu1 %v2409_v16 }
 0x259   :  { %2009 = vmatpush3.bf16.msra.mxu1 %v2543_v33 }
 0x25a   :  { %2030 = vmatprep.subr.bf16.mxu1 %v2409_v16 }
 0x25c   :  { %2011 = vmatmul.mubr.msk.bf16.vlgmr.msra.gmra.mrb[4].mxu1 %vm230_vm2, %v229_v32 }
 0x25d   :  { %2031 = vmatpush3.bf16.msra.mxu1 %v2533_v29  ;;  %2034 = vmatprep.mubr.msk.bf16.mxu1 %vm2410_vm1, %v2409_v16 }
 0x25e   :  { %2032 = vmatprep.subr.bf16.mxu1 %v2409_v16 }
 0x261   :  { %2033 = vmatpush3.bf16.msra.mxu1 %v2543_v33 }
 0x262   :  { %2038 = vmatprep.subr.bf16.mxu1 %v2409_v16 }
 0x327   :  { %v268_v35 = vpop.f32.mrb[0].mxu1 }
 0x328   :  { %v269_v36 = vadd.f32 %v2560_v34, %v268_v35  ;;  %v2004_v37 = vpop.f32.mrb[1].mxu1  ;;  %v155_v35 = vadd.f32 %v2490_v5, %v154_v17  ;;  %v160_v17 = vadd.f32 %v2608_v15, %v2490_v5 }
 0x329   :  { %v271_v38 = vpop.f32.mrb[2].mxu1 }
 0x32a   :  { %2254 = vtanh.f32 %v269_v36  ;;  %v2005_v39 = vpop.f32.mrb[3].mxu1  ;;  %v1841_v48 = vmul.f32 -1.442695, %v269_v36 }
 0x32f   :  { %v326_v41 = vpop.f32.mrb[4].mxu1 }
 0x330   :  { %v327_v42 = vadd.f32 %v326_v41, %v150_v40  ;;  %v2012_v43 = vpop.f32.mrb[5].mxu1 }
 0x331   :  { %v329_v44 = vpop.f32.mrb[6].mxu1 }
 0x332   :  { %2256 = vtanh.f32 %v327_v42  ;;  %v2013_v45 = vpop.f32.mrb[7].mxu1  ;;  %v1843_v49 = vmul.f32 -1.442695, %v327_v42 }
 0x333   :  { %2258 = vpow2.f32 %v1841_v48 }
 0x334   :  { %v2255_v46 = vpop.eup %2254  ;;  %2260 = vpow2.f32 %v1843_v49 }
 0x335   :  { %282 = vrot.lane.b32.xlu0 %v2255_v46, %s2408_s1 }
 0x33c   :  { %v2257_v47 = vpop.eup %2256 }
 0x33d   :  { %345 = vrot.lane.b32.xlu1 %v2257_v47, %s2408_s1  ;;  %v2259_v50 = vpop.eup %2258 }
 0x33e   :  { %v277_v51 = vadd.f32 1.0, %v2259_v50  ;;  %v2261_v52 = vpop.eup %2260 }
 0x33f   :  { %v335_v53 = vadd.f32 1.0, %v2261_v52 }
 0x340   :  { %2262 = vrcp.f32 %v277_v51 }
 0x341   :  { %2264 = vrcp.f32 %v335_v53 }
 0x34a   :  { %v2263_v55 = vpop.eup %2262 }
 0x34b   :  { %v2265_v58 = vpop.eup %2264 }
 0x34c   :  { %v343_v62 = vmul.f32 %v2265_v58, %v341_v54 }
 0x3a7   :  { %v283_v56 = vpop.permute.xlu0 %282 }
 0x3a8   :  { %v2567_v57 = vmul.f32 %v2263_v55, %v283_v56 }
 0x3aa   :  { %2266 = vtanh.f32 %v2567_v57 }
 0x3af   :  { %v346_v59 = vpop.permute.xlu1 %345 }
 0x3b0   :  { %v348_v60 = vmul.f32 %v2265_v58, %v346_v59 }
 0x3b2   :  { %350 = vrot.lane.b32.xlu1 %v348_v60, %s2412_s4 }
 0x3b4   :  { %v2267_v61 = vpop.eup %2266 }
 0x3b5   :  { %288 = vrot.lane.b32.xlu0 %v2267_v61, %s2411_s16 }
 0x424   :  { %v351_v63 = vpop.permute.xlu1 %350 }
 0x425   :  { %v2572_v0 = vadd.f32 %v351_v63, %v343_v62 }
 0x427   :  { %2268 = vtanh.f32 %v2572_v0  ;;  %v289_v1 = vpop.permute.xlu0 %288 }
 0x428   :  { %v2575_v2 = vmul.f32 %v2263_v55, %v289_v1 }
 0x42a   :  { %v407_v7 = vpack.c.bf16 %v2575_v2, %v2575_v2 }
 0x42c   :  { %409 = vrot.lane.b32.xlu0 %v407_v7, %s2412_s4 }
 0x431   :  { %v2269_v11 = vpop.eup %2268 }
 0x432   :  { %356 = vrot.lane.b32.xlu1 %v2269_v11, %s2408_s1 }
 0x49e   :  { %v410_v32 = vpop.permute.xlu0 %409 }
 0x4a4   :  { %v357_v12 = vpop.permute.xlu1 %356 }
 0x4a5   :  { %v359_v13 = vmul.f32 %v2265_v58, %v357_v12 }
 0x4a7   :  { %v360_v14 = vpack.c.bf16 %v359_v13, %v359_v13 }
 0x4a9   :  { %362 = vrot.lane.b32.xlu1 %v360_v14, %s2412_s4 }
 0x51b   :  { %v363_v30 = vpop.permute.xlu1 %362 }
 0x51c   :  { %2019 = vmatmul.mubr.msk.bf16.vlgmr.msra.gmra.mrb[8].mxu0 %vm230_vm2, %v363_v30  ;;  %2035 = vmatmul.mubr.msk.bf16.vlgmr.msra.gmra.mrb[8].mxu1 %vm230_vm2, %v363_v30 }
 0x51d   :  { %2023 = vmatpush3.bf16.msra.mxu0 %v2624_v26  ;;  %2026 = vmatprep.mubr.msk.bf16.mxu0 %vm2410_vm1, %v2409_v16 }
 0x51e   :  { %2024 = vmatprep.subr.bf16.mxu0 %v2409_v16  ;;  %2039 = vmatpush3.bf16.msra.mxu1 %v2508_v20 }
 0x51f   :  { %2040 = vmatprep.subr.bf16.mxu1 %v2409_v16  ;;  %2042 = vmatprep.mubr.msk.bf16.mxu1 %vm2410_vm1, %v2409_v16 }
 0x521   :  { %2025 = vmatpush3.bf16.msra.mxu0 %v2635_v31 }
 0x522   :  { %2054 = vmatprep.subr.bf16.mxu0 %v2409_v16  ;;  %2041 = vmatpush3.bf16.msra.mxu1 %v2515_v22 }
 0x523   :  { %2046 = vmatprep.subr.bf16.mxu1 %v2409_v16 }
 0x528   :  { %2027 = vmatmul.mubr.msk.bf16.vlgmr.msra.gmra.mrb[8].mxu0 %vm230_vm2, %v410_v32 }
 0x529   :  { %2055 = vmatpush3.bf16.msra.mxu0 %v2533_v29  ;;  %2058 = vmatprep.mubr.msk.bf16.mxu0 %vm2410_vm1, %v2409_v16 }
 0x52a   :  { %2056 = vmatprep.subr.bf16.mxu0 %v2409_v16 }
 0x52d   :  { %2057 = vmatpush3.bf16.msra.mxu0 %v2543_v33 }
 0x52e   :  { %2062 = vmatprep.subr.bf16.mxu0 %v2409_v16 }
 0x5ef   :  { %v517_v36 = vpop.f32.mrb[8].mxu1 }
 0x5f0   :  { %v518_v37 = vadd.f32 %v517_v36, %v155_v35  ;;  %v2036_v38 = vpop.f32.mrb[9].mxu1 }
 0x5f1   :  { %v520_v39 = vpop.f32.mrb[10].mxu1 }
 0x5f2   :  { %2270 = vtanh.f32 %v518_v37  ;;  %v2037_v40 = vpop.f32.mrb[11].mxu1  ;;  %v1848_v48 = vmul.f32 -1.442695, %v518_v37 }
 0x5fb   :  { %v448_v41 = vpop.f32.mrb[8].mxu0 }
 0x5fc   :  { %v2271_v42 = vpop.eup %2270  ;;  %v2206_v43 = vadd.f32 %v2560_v34, %v448_v41  ;;  %v2028_v44 = vpop.f32.mrb[9].mxu0 }
 0x5fd   :  { %532 = vrot.lane.b32.xlu1 %v2271_v42, %s2408_s1  ;;  %v451_v45 = vpop.f32.mrb[10].mxu0 }
 0x5fe   :  { %2272 = vtanh.f32 %v2206_v43  ;;  %v2029_v46 = vpop.f32.mrb[11].mxu0  ;;  %v1846_v49 = vmul.f32 -1.442695, %v2206_v43 }
 0x5ff   :  { %2274 = vpow2.f32 %v1848_v48 }
 0x600   :  { %2276 = vpow2.f32 %v1846_v49 }
 0x608   :  { %v2273_v47 = vpop.eup %2272 }
 0x609   :  { %468 = vrot.lane.b32.xlu0 %v2273_v47, %s2408_s1  ;;  %v2275_v50 = vpop.eup %2274 }
 0x60a   :  { %v526_v51 = vadd.f32 1.0, %v2275_v50  ;;  %v2277_v52 = vpop.eup %2276 }
 0x60b   :  { %v458_v53 = vadd.f32 1.0, %v2277_v52 }
 0x60c   :  { %2278 = vrcp.f32 %v526_v51 }
 0x60d   :  { %463 = vrot.lane.b32.xlu0 %v2567_v57, %s2412_s4  ;;  %2280 = vrcp.f32 %v458_v53 }
 0x616   :  { %v2279_v54 = vpop.eup %2278 }
 0x617   :  { %v2281_v58 = vpop.eup %2280  ;;  %v530_v57 = vmul.f32 %v2279_v54, %v2572_v0 }
 0x66f   :  { %v533_v55 = vpop.permute.xlu1 %532 }
 0x670   :  { %v535_v56 = vmul.f32 %v2279_v54, %v533_v55 }
 0x672   :  { %537 = vrot.lane.b32.xlu1 %v535_v56, %s2412_s4 }
 0x67b   :  { %v469_v59 = vpop.permute.xlu0 %468 }
 0x67c   :  { %v471_v60 = vmul.f32 %v2281_v58, %v469_v59 }
 0x67e   :  { %473 = vrot.lane.b32.xlu1 %v471_v60, %s2412_s4 }
 0x67f   :  { %v464_v63 = vpop.permute.xlu0 %463 }
 0x680   :  { %v466_v1 = vmul.f32 %v2281_v58, %v464_v63 }
 0x6e4   :  { %v538_v61 = vpop.permute.xlu1 %537 }
 0x6e5   :  { %v2664_v62 = vadd.f32 %v538_v61, %v530_v57 }
 0x6e7   :  { %2282 = vtanh.f32 %v2664_v62 }
 0x6f0   :  { %v474_v3 = vpop.permute.xlu1 %473 }
 0x6f1   :  { %v2283_v4 = vpop.eup %2282  ;;  %v2667_v6 = vadd.f32 %v474_v3, %v466_v1 }
 0x6f2   :  { %543 = vrot.lane.b32.xlu0 %v2283_v4, %s2408_s1 }
 0x6f3   :  { %2284 = vtanh.f32 %v2667_v6 }
 0x6fd   :  { %v2285_v7 = vpop.eup %2284 }
 0x6fe   :  { %479 = vrot.lane.b32.xlu1 %v2285_v7, %s2408_s1  ;;  %v165_v7 = vadd.f32 %v2490_v5, %v2612_v19 }
 0x764   :  { %v544_v8 = vpop.permute.xlu0 %543 }
 0x765   :  { %v546_v0 = vmul.f32 %v2279_v54, %v544_v8 }
 0x767   :  { %v547_v9 = vpack.c.bf16 %v546_v0, %v546_v0 }
 0x769   :  { %549 = vrot.lane.b32.xlu0 %v547_v9, %s2412_s4 }
 0x770   :  { %v480_v10 = vpop.permute.xlu1 %479 }
 0x771   :  { %v2673_v11 = vmul.f32 %v2281_v58, %v480_v10 }
 0x773   :  { %v594_v12 = vpack.c.bf16 %v2673_v11, %v2673_v11 }
 0x775   :  { %596 = vrot.lane.b32.xlu1 %v594_v12, %s2412_s4 }
 0x7db   :  { %v550_v13 = vpop.permute.xlu0 %549 }
 0x7dc   :  { %2043 = vmatmul.mubr.msk.bf16.vlgmr.msra.gmra.mrb[12].mxu1 %vm230_vm2, %v550_v13  ;;  %2059 = vmatmul.mubr.msk.bf16.vlgmr.msra.gmra.mrb[12].mxu0 %vm230_vm2, %v550_v13 }
 0x7dd   :  { %2047 = vmatpush3.bf16.msra.mxu1 %v2624_v26  ;;  %2050 = vmatprep.mubr.msk.bf16.mxu1 %vm2410_vm1, %v2409_v16 }
 0x7de   :  { %2048 = vmatprep.subr.bf16.mxu1 %v2409_v16  ;;  %2063 = vmatpush3.bf16.msra.mxu0 %v2508_v20 }
 0x7df   :  { %2064 = vmatprep.subr.bf16.mxu0 %v2409_v16  ;;  %2066 = vmatprep.mubr.msk.bf16.mxu0 %vm2410_vm1, %v2409_v16 }
 0x7e1   :  { %2049 = vmatpush3.bf16.msra.mxu1 %v2635_v31 }
 0x7e2   :  { %2078 = vmatprep.subr.bf16.mxu1 %v2409_v16  ;;  %2065 = vmatpush3.bf16.msra.mxu0 %v2515_v22 }
 0x7e3   :  { %2070 = vmatprep.subr.bf16.mxu0 %v2409_v16 }
 0x7e7   :  { %v597_v14 = vpop.permute.xlu1 %596 }
 0x7e8   :  { %2051 = vmatmul.mubr.msk.bf16.vlgmr.msra.gmra.mrb[12].mxu1 %vm230_vm2, %v597_v14 }
 0x7e9   :  { %2079 = vmatpush3.bf16.msra.mxu1 %v2533_v29  ;;  %2082 = vmatprep.mubr.msk.bf16.mxu1 %vm2410_vm1, %v2409_v16 }
 0x7ea   :  { %2080 = vmatprep.subr.bf16.mxu1 %v2409_v16 }
 0x7ed   :  { %2081 = vmatpush3.bf16.msra.mxu1 %v2543_v33 }
 0x7ee   :  { %2086 = vmatprep.subr.bf16.mxu1 %v2409_v16 }
 0x8af   :  { %v700_v24 = vpop.f32.mrb[12].mxu0 }
 0x8b0   :  { %v701_v25 = vadd.f32 %v700_v24, %v160_v17  ;;  %v2060_v27 = vpop.f32.mrb[13].mxu0 }
 0x8b1   :  { %v703_v28 = vpop.f32.mrb[14].mxu0 }
 0x8b2   :  { %2286 = vtanh.f32 %v701_v25  ;;  %v2061_v30 = vpop.f32.mrb[15].mxu0  ;;  %v1853_v15 = vmul.f32 -1.442695, %v701_v25 }
 0x8bb   :  { %v635_v32 = vpop.f32.mrb[12].mxu1 }
 0x8bc   :  { %v2287_v35 = vpop.eup %2286  ;;  %v2207_v36 = vadd.f32 %v2560_v34, %v635_v32  ;;  %v2052_v37 = vpop.f32.mrb[13].mxu1 }
 0x8bd   :  { %v638_v38 = vpop.f32.mrb[14].mxu1  ;;  %715 = vrot.lane.b32.xlu0 %v2287_v35, %s2408_s1 }
 0x8be   :  { %2288 = vtanh.f32 %v2207_v36  ;;  %v2053_v39 = vpop.f32.mrb[15].mxu1  ;;  %v1851_v41 = vmul.f32 -1.442695, %v2207_v36 }
 0x8bf   :  { %2290 = vpow2.f32 %v1853_v15 }
 0x8c0   :  { %2292 = vpow2.f32 %v1851_v41 }
 0x8c8   :  { %v2289_v40 = vpop.eup %2288 }
 0x8c9   :  { %651 = vrot.lane.b32.xlu1 %v2289_v40, %s2408_s1  ;;  %v2291_v42 = vpop.eup %2290 }
 0x8ca   :  { %v709_v43 = vadd.f32 1.0, %v2291_v42  ;;  %v2293_v44 = vpop.eup %2292 }
 0x8cb   :  { %v645_v45 = vadd.f32 1.0, %v2293_v44 }
 0x8cc   :  { %2294 = vrcp.f32 %v709_v43 }
 0x8cd   :  { %2296 = vrcp.f32 %v645_v45 }
 0x8d6   :  { %v2295_v46 = vpop.eup %2294 }
 0x8d7   :  { %v2297_v49 = vpop.eup %2296  ;;  %v713_v52 = vmul.f32 %v2295_v46, %v2664_v62 }
 0x8d8   :  { %v649_v55 = vmul.f32 %v2297_v49, %v2667_v6 }
 0x92f   :  { %v716_v47 = vpop.permute.xlu0 %715 }
 0x930   :  { %v718_v48 = vmul.f32 %v2295_v46, %v716_v47 }
 0x932   :  { %720 = vrot.lane.b32.xlu0 %v718_v48, %s2412_s4 }
 0x93b   :  { %v652_v50 = vpop.permute.xlu1 %651 }
 0x93c   :  { %v654_v51 = vmul.f32 %v2297_v49, %v652_v50 }
 0x93e   :  { %656 = vrot.lane.b32.xlu1 %v654_v51, %s2412_s4 }
 0x9a4   :  { %v721_v53 = vpop.permute.xlu0 %720 }
 0x9a5   :  { %v2707_v54 = vadd.f32 %v721_v53, %v713_v52 }
 0x9a7   :  { %2298 = vtanh.f32 %v2707_v54 }
 0x9b0   :  { %v657_v56 = vpop.permute.xlu1 %656 }
 0x9b1   :  { %v2299_v58 = vpop.eup %2298  ;;  %v2711_v59 = vadd.f32 %v657_v56, %v649_v55 }
 0x9b2   :  { %726 = vrot.lane.b32.xlu0 %v2299_v58, %s2408_s1 }
 0x9b3   :  { %2300 = vtanh.f32 %v2711_v59 }
 0x9bd   :  { %v2301_v60 = vpop.eup %2300 }
 0x9be   :  { %662 = vrot.lane.b32.xlu1 %v2301_v60, %s2408_s1  ;;  %v170_v60 = vadd.f32 %v2610_v18, %v2490_v5 }
 0xa24   :  { %v727_v57 = vpop.permute.xlu0 %726 }
 0xa25   :  { %v729_v61 = vmul.f32 %v2295_v46, %v727_v57 }
 0xa27   :  { %v730_v62 = vpack.c.bf16 %v729_v61, %v729_v61 }
 0xa29   :  { %732 = vrot.lane.b32.xlu0 %v730_v62, %s2412_s4 }
 0xa30   :  { %v663_v63 = vpop.permute.xlu1 %662 }
 0xa31   :  { %v2717_v1 = vmul.f32 %v2297_v49, %v663_v63 }
 0xa33   :  { %v777_v3 = vpack.c.bf16 %v2717_v1, %v2717_v1 }
 0xa35   :  { %779 = vrot.lane.b32.xlu1 %v777_v3, %s2412_s4 }
 0xa9b   :  { %v733_v4 = vpop.permute.xlu0 %732 }
 0xa9c   :  { %2067 = vmatmul.mubr.msk.bf16.vlgmr.msra.gmra.mrb[16].mxu0 %vm230_vm2, %v733_v4  ;;  %2083 = vmatmul.mubr.msk.bf16.vlgmr.msra.gmra.mrb[16].mxu1 %vm230_vm2, %v733_v4 }
 0xa9d   :  { %2071 = vmatpush3.bf16.msra.mxu0 %v2624_v26  ;;  %2074 = vmatprep.mubr.msk.bf16.mxu0 %vm2410_vm1, %v2409_v16 }
 0xa9e   :  { %2072 = vmatprep.subr.bf16.mxu0 %v2409_v16  ;;  %2087 = vmatpush3.bf16.msra.mxu1 %v2508_v20 }
 0xa9f   :  { %2088 = vmatprep.subr.bf16.mxu1 %v2409_v16  ;;  %2090 = vmatprep.mubr.msk.bf16.mxu1 %vm2410_vm1, %v2409_v16 }
 0xaa1   :  { %2073 = vmatpush3.bf16.msra.mxu0 %v2635_v31 }
 0xaa2   :  { %2102 = vmatprep.subr.bf16.mxu0 %v2409_v16  ;;  %2089 = vmatpush3.bf16.msra.mxu1 %v2515_v22 }
 0xaa3   :  { %2094 = vmatprep.subr.bf16.mxu1 %v2409_v16 }
 0xaa7   :  { %v780_v6 = vpop.permute.xlu1 %779 }
 0xaa8   :  { %2075 = vmatmul.mubr.msk.bf16.vlgmr.msra.gmra.mrb[16].mxu0 %vm230_vm2, %v780_v6 }
 0xaa9   :  { %2103 = vmatpush3.bf16.msra.mxu0 %v2533_v29  ;;  %2106 = vmatprep.mubr.msk.bf16.mxu0 %vm2410_vm1, %v2409_v16 }
 0xaaa   :  { %2104 = vmatprep.subr.bf16.mxu0 %v2409_v16 }
 0xaad   :  { %2105 = vmatpush3.bf16.msra.mxu0 %v2543_v33 }
 0xaae   :  { %2110 = vmatprep.subr.bf16.mxu0 %v2409_v16 }
 0xb6f   :  { %v883_v8 = vpop.f32.mrb[16].mxu1 }
 0xb70   :  { %v884_v0 = vadd.f32 %v883_v8, %v165_v7  ;;  %v2084_v9 = vpop.f32.mrb[17].mxu1 }
 0xb71   :  { %v886_v10 = vpop.f32.mrb[18].mxu1 }
 0xb72   :  { %2302 = vtanh.f32 %v884_v0  ;;  %v2085_v12 = vpop.f32.mrb[19].mxu1  ;;  %v1858_v19 = vmul.f32 -1.442695, %v884_v0 }
 0xb7b   :  { %v818_v13 = vpop.f32.mrb[16].mxu0 }
 0xb7c   :  { %v2303_v14 = vpop.eup %2302  ;;  %v2208_v17 = vadd.f32 %v2560_v34, %v818_v13  ;;  %v2076_v24 = vpop.f32.mrb[17].mxu0 }
 0xb7d   :  { %898 = vrot.lane.b32.xlu0 %v2303_v14, %s2408_s1  ;;  %v821_v25 = vpop.f32.mrb[18].mxu0 }
 0xb7e   :  { %2304 = vtanh.f32 %v2208_v17  ;;  %v2077_v27 = vpop.f32.mrb[19].mxu0  ;;  %v1856_v30 = vmul.f32 -1.442695, %v2208_v17 }
 0xb7f   :  { %2306 = vpow2.f32 %v1858_v19 }
 0xb80   :  { %2308 = vpow2.f32 %v1856_v30 }
 0xb88   :  { %v2305_v28 = vpop.eup %2304 }
 0xb89   :  { %834 = vrot.lane.b32.xlu1 %v2305_v28, %s2408_s1  ;;  %v2307_v32 = vpop.eup %2306 }
 0xb8a   :  { %v892_v35 = vadd.f32 1.0, %v2307_v32  ;;  %v2309_v36 = vpop.eup %2308 }
 0xb8b   :  { %v828_v37 = vadd.f32 1.0, %v2309_v36 }
 0xb8c   :  { %2310 = vrcp.f32 %v892_v35 }
 0xb8d   :  { %2312 = vrcp.f32 %v828_v37 }
 0xb96   :  { %v2311_v38 = vpop.eup %2310 }
 0xb97   :  { %v2313_v15 = vpop.eup %2312  ;;  %v896_v43 = vmul.f32 %v2311_v38, %v2707_v54 }
 0xb98   :  { %v832_v46 = vmul.f32 %v2313_v15, %v2711_v59 }
 0xbef   :  { %v899_v39 = vpop.permute.xlu0 %898 }
 0xbf0   :  { %v901_v40 = vmul.f32 %v2311_v38, %v899_v39 }
 0xbf2   :  { %903 = vrot.lane.b32.xlu0 %v901_v40, %s2412_s4 }
 0xbfb   :  { %v835_v41 = vpop.permute.xlu1 %834 }
 0xbfc   :  { %v837_v42 = vmul.f32 %v2313_v15, %v835_v41 }
 0xbfe   :  { %839 = vrot.lane.b32.xlu1 %v837_v42, %s2412_s4 }
 0xc64   :  { %v904_v44 = vpop.permute.xlu0 %903 }
 0xc65   :  { %v2751_v45 = vadd.f32 %v904_v44, %v896_v43 }
 0xc67   :  { %2314 = vtanh.f32 %v2751_v45 }
 0xc70   :  { %v840_v47 = vpop.permute.xlu1 %839 }
 0xc71   :  { %v2315_v48 = vpop.eup %2314  ;;  %v2755_v49 = vadd.f32 %v840_v47, %v832_v46 }
 0xc72   :  { %909 = vrot.lane.b32.xlu0 %v2315_v48, %s2408_s1 }
 0xc73   :  { %2316 = vtanh.f32 %v2755_v49 }
 0xc7d   :  { %v2317_v50 = vpop.eup %2316 }
 0xc7e   :  { %845 = vrot.lane.b32.xlu1 %v2317_v50, %s2408_s1  ;;  %v175_v50 = vadd.f32 %v2490_v5, %v2616_v23 }
 0xce4   :  { %v910_v51 = vpop.permute.xlu0 %909 }
 0xce5   :  { %v912_v52 = vmul.f32 %v2311_v38, %v910_v51 }
 0xce7   :  { %v913_v53 = vpack.c.bf16 %v912_v52, %v912_v52 }
 0xce9   :  { %915 = vrot.lane.b32.xlu0 %v913_v53, %s2412_s4 }
 0xcf0   :  { %v846_v54 = vpop.permute.xlu1 %845 }
 0xcf1   :  { %v2761_v55 = vmul.f32 %v2313_v15, %v846_v54 }
 0xcf3   :  { %v960_v56 = vpack.c.bf16 %v2761_v55, %v2761_v55 }
 0xcf5   :  { %962 = vrot.lane.b32.xlu1 %v960_v56, %s2412_s4 }
 0xd5b   :  { %v916_v58 = vpop.permute.xlu0 %915 }
 0xd5c   :  { %2091 = vmatmul.mubr.msk.bf16.vlgmr.msra.gmra.mrb[20].mxu1 %vm230_vm2, %v916_v58  ;;  %2107 = vmatmul.mubr.msk.bf16.vlgmr.msra.gmra.mrb[20].mxu0 %vm230_vm2, %v916_v58 }
 0xd5d   :  { %2095 = vmatpush3.bf16.msra.mxu1 %v2624_v26  ;;  %2098 = vmatprep.mubr.msk.bf16.mxu1 %vm2410_vm1, %v2409_v16 }
 0xd5e   :  { %2096 = vmatprep.subr.bf16.mxu1 %v2409_v16  ;;  %2111 = vmatpush3.bf16.msra.mxu0 %v2508_v20 }
 0xd5f   :  { %2112 = vmatprep.subr.bf16.mxu0 %v2409_v16  ;;  %2114 = vmatprep.mubr.msk.bf16.mxu0 %vm2410_vm1, %v2409_v16 }
 0xd61   :  { %2097 = vmatpush3.bf16.msra.mxu1 %v2635_v31 }
 0xd62   :  { %2126 = vmatprep.subr.bf16.mxu1 %v2409_v16  ;;  %2113 = vmatpush3.bf16.msra.mxu0 %v2515_v22 }
 0xd63   :  { %2118 = vmatprep.subr.bf16.mxu0 %v2409_v16 }
 0xd67   :  { %v963_v59 = vpop.permute.xlu1 %962 }
 0xd68   :  { %2099 = vmatmul.mubr.msk.bf16.vlgmr.msra.gmra.mrb[20].mxu1 %vm230_vm2, %v963_v59 }
 0xd69   :  { %2127 = vmatpush3.bf16.msra.mxu1 %v2533_v29  ;;  %2130 = vmatprep.mubr.msk.bf16.mxu1 %vm2410_vm1, %v2409_v16 }
 0xd6a   :  { %2128 = vmatprep.subr.bf16.mxu1 %v2409_v16 }
 0xd6d   :  { %2129 = vmatpush3.bf16.msra.mxu1 %v2543_v33 }
 0xd6e   :  { %2134 = vmatprep.subr.bf16.mxu1 %v2409_v16 }
 0xe2f   :  { %v1066_v57 = vpop.f32.mrb[20].mxu0 }
 0xe30   :  { %v1067_v61 = vadd.f32 %v1066_v57, %v170_v60  ;;  %v2108_v62 = vpop.f32.mrb[21].mxu0 }
 0xe31   :  { %v1069_v63 = vpop.f32.mrb[22].mxu0 }
 0xe32   :  { %2318 = vtanh.f32 %v1067_v61  ;;  %v2109_v3 = vpop.f32.mrb[23].mxu0  ;;  %v1863_v18 = vmul.f32 -1.442695, %v1067_v61 }
 0xe3b   :  { %v1001_v4 = vpop.f32.mrb[20].mxu1 }
 0xe3c   :  { %v2319_v6 = vpop.eup %2318  ;;  %v2209_v7 = vadd.f32 %v2560_v34, %v1001_v4  ;;  %v2100_v8 = vpop.f32.mrb[21].mxu1 }
 0xe3d   :  { %v1004_v0 = vpop.f32.mrb[22].mxu1  ;;  %1081 = vrot.lane.b32.xlu0 %v2319_v6, %s2408_s1 }
 0xe3e   :  { %2320 = vtanh.f32 %v2209_v7  ;;  %v2101_v9 = vpop.f32.mrb[23].mxu1  ;;  %v1861_v12 = vmul.f32 -1.442695, %v2209_v7 }
 0xe3f   :  { %2322 = vpow2.f32 %v1863_v18 }
 0xe40   :  { %2324 = vpow2.f32 %v1861_v12 }
 0xe48   :  { %v2321_v10 = vpop.eup %2320 }
 0xe49   :  { %1017 = vrot.lane.b32.xlu1 %v2321_v10, %s2408_s1  ;;  %v2323_v13 = vpop.eup %2322 }
 0xe4a   :  { %v1075_v14 = vadd.f32 1.0, %v2323_v13  ;;  %v2325_v17 = vpop.eup %2324 }
 0xe4b   :  { %v1011_v24 = vadd.f32 1.0, %v2325_v17 }
 0xe4c   :  { %2326 = vrcp.f32 %v1075_v14 }
 0xe4d   :  { %2328 = vrcp.f32 %v1011_v24 }
 0xe56   :  { %v2327_v25 = vpop.eup %2326 }
 0xe57   :  { %v2329_v19 = vpop.eup %2328  ;;  %v1079_v35 = vmul.f32 %v2327_v25, %v2751_v45 }
 0xe58   :  { %v1015_v38 = vmul.f32 %v2329_v19, %v2755_v49 }
 0xeaf   :  { %v1082_v27 = vpop.permute.xlu0 %1081 }
 0xeb0   :  { %v1084_v28 = vmul.f32 %v2327_v25, %v1082_v27 }
 0xeb2   :  { %1086 = vrot.lane.b32.xlu0 %v1084_v28, %s2412_s4 }
 0xebb   :  { %v1018_v30 = vpop.permute.xlu1 %1017 }
 0xebc   :  { %v1020_v32 = vmul.f32 %v2329_v19, %v1018_v30 }
 0xebe   :  { %1022 = vrot.lane.b32.xlu1 %v1020_v32, %s2412_s4 }
 0xf24   :  { %v1087_v36 = vpop.permute.xlu0 %1086 }
 0xf25   :  { %v2795_v37 = vadd.f32 %v1087_v36, %v1079_v35 }
 0xf27   :  { %2330 = vtanh.f32 %v2795_v37 }
 0xf30   :  { %v1023_v39 = vpop.permute.xlu1 %1022 }
 0xf31   :  { %v2331_v40 = vpop.eup %2330  ;;  %v2799_v15 = vadd.f32 %v1023_v39, %v1015_v38  ;;  %v2406_v39 = vld [vmem:[%s3025_s3] ss:$0 sm:$0xff] }
 0xf32   :  { %1092 = vrot.lane.b32.xlu0 %v2331_v40, %s2408_s1 }
 0xf33   :  { %2332 = vtanh.f32 %v2799_v15 }
 0xf3d   :  { %v2333_v41 = vpop.eup %2332 }
 0xf3e   :  { %1028 = vrot.lane.b32.xlu1 %v2333_v41, %s2408_s1 }
 0xfa4   :  { %v1093_v42 = vpop.permute.xlu0 %1092 }
 0xfa5   :  { %v1095_v43 = vmul.f32 %v2327_v25, %v1093_v42 }
 0xfa7   :  { %v1096_v44 = vpack.c.bf16 %v1095_v43, %v1095_v43 }
 0xfa9   :  { %1098 = vrot.lane.b32.xlu0 %v1096_v44, %s2412_s4 }
 0xfb0   :  { %v1029_v45 = vpop.permute.xlu1 %1028 }
 0xfb1   :  { %v2805_v46 = vmul.f32 %v2329_v19, %v1029_v45 }
 0xfb3   :  { %v1143_v47 = vpack.c.bf16 %v2805_v46, %v2805_v46 }
 0xfb5   :  { %1145 = vrot.lane.b32.xlu1 %v1143_v47, %s2412_s4 }
0x101b   :  { %v1099_v48 = vpop.permute.xlu0 %1098 }
0x101c   :  { %2115 = vmatmul.mubr.msk.bf16.vlgmr.msra.gmra.mrb[24].mxu0 %vm230_vm2, %v1099_v48  ;;  %2131 = vmatmul.mubr.msk.bf16.vlgmr.msra.gmra.mrb[24].mxu1 %vm230_vm2, %v1099_v48 }
0x101d   :  { %2119 = vmatpush3.bf16.msra.mxu0 %v2624_v26  ;;  %2122 = vmatprep.mubr.msk.bf16.mxu0 %vm2410_vm1, %v2409_v16 }
0x101e   :  { %2120 = vmatprep.subr.bf16.mxu0 %v2409_v16  ;;  %2135 = vmatpush3.bf16.msra.mxu1 %v2508_v20 }
0x101f   :  { %2136 = vmatprep.subr.bf16.mxu1 %v2409_v16  ;;  %2138 = vmatprep.mubr.msk.bf16.mxu1 %vm2410_vm1, %v2409_v16 }
0x1021   :  { %2121 = vmatpush3.bf16.msra.mxu0 %v2635_v31 }
0x1022   :  { %2150 = vmatprep.subr.bf16.mxu0 %v2409_v16  ;;  %2137 = vmatpush3.bf16.msra.mxu1 %v2515_v22 }
0x1023   :  { %2142 = vmatprep.subr.bf16.mxu1 %v2409_v16 }
0x1027   :  { %v1146_v49 = vpop.permute.xlu1 %1145 }
0x1028   :  { %2123 = vmatmul.mubr.msk.bf16.vlgmr.msra.gmra.mrb[24].mxu0 %vm230_vm2, %v1146_v49 }
0x1029   :  { %2151 = vmatpush3.bf16.msra.mxu0 %v2533_v29  ;;  %2154 = vmatprep.mubr.msk.bf16.mxu0 %vm2410_vm1, %v2409_v16 }
0x102a   :  { %2152 = vmatprep.subr.bf16.mxu0 %v2409_v16 }
0x102d   :  { %2153 = vmatpush3.bf16.msra.mxu0 %v2543_v33 }
0x102e   :  { %2158 = vmatprep.subr.bf16.mxu0 %v2409_v16 }
0x10ef   :  { %v1249_v51 = vpop.f32.mrb[24].mxu1 }
0x10f0   :  { %v1250_v52 = vadd.f32 %v1249_v51, %v175_v50  ;;  %v2132_v53 = vpop.f32.mrb[25].mxu1 }
0x10f1   :  { %v1252_v54 = vpop.f32.mrb[26].mxu1 }
0x10f2   :  { %2334 = vtanh.f32 %v1250_v52  ;;  %v2133_v56 = vpop.f32.mrb[27].mxu1  ;;  %v1868_v5 = vmul.f32 -1.442695, %v1250_v52 }
0x10fb   :  { %v1184_v58 = vpop.f32.mrb[24].mxu0 }
0x10fc   :  { %v2335_v29 = vpop.eup %2334  ;;  %v2210_v59 = vadd.f32 %v2560_v34, %v1184_v58  ;;  %v2124_v60 = vpop.f32.mrb[25].mxu0 }
0x10fd   :  { %1264 = vrot.lane.b32.xlu0 %v2335_v29, %s2408_s1  ;;  %v1187_v57 = vpop.f32.mrb[26].mxu0 }
0x10fe   :  { %2336 = vtanh.f32 %v2210_v59  ;;  %v2125_v33 = vpop.f32.mrb[27].mxu0  ;;  %v1866_v23 = vmul.f32 -1.442695, %v2210_v59 }
0x10ff   :  { %2338 = vpow2.f32 %v1868_v5 }
0x1100   :  { %2340 = vpow2.f32 %v1866_v23 }
0x1108   :  { %v2337_v61 = vpop.eup %2336 }
0x1109   :  { %1200 = vrot.lane.b32.xlu1 %v2337_v61, %s2408_s1  ;;  %v2339_v62 = vpop.eup %2338 }
0x110a   :  { %v1258_v63 = vadd.f32 1.0, %v2339_v62  ;;  %v2341_v3 = vpop.eup %2340 }
0x110b   :  { %v1194_v4 = vadd.f32 1.0, %v2341_v3 }
0x110c   :  { %2342 = vrcp.f32 %v1258_v63 }
0x110d   :  { %2344 = vrcp.f32 %v1194_v4 }
0x1116   :  { %v2343_v6 = vpop.eup %2342 }
0x1117   :  { %v2345_v0 = vpop.eup %2344  ;;  %v1262_v18 = vmul.f32 %v2343_v6, %v2795_v37 }
0x1118   :  { %v1198_v14 = vmul.f32 %v2345_v0, %v2799_v15 }
0x116f   :  { %v1265_v7 = vpop.permute.xlu0 %1264 }
0x1170   :  { %v1267_v8 = vmul.f32 %v2343_v6, %v1265_v7 }
0x1172   :  { %1269 = vrot.lane.b32.xlu0 %v1267_v8, %s2412_s4 }
0x117b   :  { %v1201_v9 = vpop.permute.xlu1 %1200 }
0x117c   :  { %v1203_v10 = vmul.f32 %v2345_v0, %v1201_v9 }
0x117e   :  { %1205 = vrot.lane.b32.xlu1 %v1203_v10, %s2412_s4 }
0x11e4   :  { %v1270_v12 = vpop.permute.xlu0 %1269 }
0x11e5   :  { %v2839_v13 = vadd.f32 %v1270_v12, %v1262_v18 }
0x11e7   :  { %2346 = vtanh.f32 %v2839_v13 }
0x11f0   :  { %v1206_v17 = vpop.permute.xlu1 %1205 }
0x11f1   :  { %v2347_v24 = vpop.eup %2346  ;;  %v2843_v25 = vadd.f32 %v1206_v17, %v1198_v14  ;;  %v2407_v14 = vld [vmem:[%s3028_s6] ss:$0 sm:$0xff] }
0x11f2   :  { %1275 = vrot.lane.b32.xlu0 %v2347_v24, %s2408_s1 }
0x11f3   :  { %2348 = vtanh.f32 %v2843_v25 }
0x11fd   :  { %v2349_v27 = vpop.eup %2348 }
0x11fe   :  { %1211 = vrot.lane.b32.xlu1 %v2349_v27, %s2408_s1 }
0x1264   :  { %v1276_v28 = vpop.permute.xlu0 %1275 }
0x1265   :  { %v1278_v19 = vmul.f32 %v2343_v6, %v1276_v28 }
0x1267   :  { %v1279_v30 = vpack.c.bf16 %v1278_v19, %v1278_v19 }
0x1269   :  { %1281 = vrot.lane.b32.xlu0 %v1279_v30, %s2412_s4 }
0x1270   :  { %v1212_v32 = vpop.permute.xlu1 %1211 }
0x1271   :  { %v2849_v35 = vmul.f32 %v2345_v0, %v1212_v32 }
0x1273   :  { %v1326_v36 = vpack.c.bf16 %v2849_v35, %v2849_v35 }
0x1275   :  { %1328 = vrot.lane.b32.xlu1 %v1326_v36, %s2412_s4  ;;  %v1621_v36 = vld [vmem:[%s3030_s7] sm:$0xff] }
0x12db   :  { %v1282_v37 = vpop.permute.xlu0 %1281 }
0x12dc   :  { %2139 = vmatmul.mubr.msk.bf16.vlgmr.msra.gmra.mrb[28].mxu1 %vm230_vm2, %v1282_v37  ;;  %2155 = vmatmul.mubr.msk.bf16.vlgmr.msra.gmra.mrb[28].mxu0 %vm230_vm2, %v1282_v37  ;;  %v1622_v37 = vld [vmem:[%s3030_s7 + $0x8] sm:$0xff] }
0x12dd   :  { %2143 = vmatpush3.bf16.msra.mxu1 %v2624_v26  ;;  %2146 = vmatprep.mubr.msk.bf16.mxu1 %vm2410_vm1, %v2409_v16 }
0x12de   :  { %2144 = vmatprep.subr.bf16.mxu1 %v2409_v16  ;;  %2159 = vmatpush3.bf16.msra.mxu0 %v2508_v20  ;;  %v180_v20 = vadd.f32 %v2406_v39, %v2614_v21 }
0x12df   :  { %2160 = vmatprep.subr.bf16.mxu0 %v2409_v16  ;;  %2162 = vmatprep.mubr.msk.bf16.mxu0 %vm2410_vm1, %v2409_v16 }
0x12e1   :  { %2145 = vmatpush3.bf16.msra.mxu1 %v2635_v31 }
0x12e2   :  { %2161 = vmatpush3.bf16.msra.mxu0 %v2515_v22 }
0x12e3   :  { %2166 = vmatprep.subr.bf16.mxu0 %v2409_v16 }
0x12e7   :  { %v1329_v38 = vpop.permute.xlu1 %1328 }
0x12e8   :  { %2147 = vmatmul.mubr.msk.bf16.vlgmr.msra.gmra.mrb[28].mxu1 %vm230_vm2, %v1329_v38  ;;  %v2198_v38 = vpack.c.bf16 %v1622_v37, %v1621_v36 }
0x12ea   :  { %2199 = vmatprep.subr.bf16.mxu1 %v2198_v38 }
0x12eb   :  { %2201 = vmatpush3.bf16.msra.mxu1 %v2198_v38 }
0x13af   :  { %v1432_v40 = vpop.f32.mrb[28].mxu0 }
0x13b0   :  { %v1433_v15 = vadd.f32 %v1432_v40, %v180_v20  ;;  %v2156_v41 = vpop.f32.mrb[29].mxu0 }
0x13b1   :  { %v1435_v42 = vpop.f32.mrb[30].mxu0 }
0x13b2   :  { %2350 = vtanh.f32 %v1433_v15  ;;  %v2157_v43 = vpop.f32.mrb[31].mxu0  ;;  %v1873_v21 = vmul.f32 -1.442695, %v1433_v15 }
0x13bb   :  { %v1367_v44 = vpop.f32.mrb[28].mxu1 }
0x13bc   :  { %v2351_v45 = vpop.eup %2350  ;;  %v2211_v22 = vadd.f32 %v2560_v34, %v1367_v44  ;;  %v2148_v47 = vpop.f32.mrb[29].mxu1 }
0x13bd   :  { %v1370_v48 = vpop.f32.mrb[30].mxu1  ;;  %1447 = vrot.lane.b32.xlu0 %v2351_v45, %s2408_s1 }
0x13be   :  { %2352 = vtanh.f32 %v2211_v22  ;;  %v2149_v49 = vpop.f32.mrb[31].mxu1  ;;  %v1871_v51 = vmul.f32 -1.442695, %v2211_v22  ;;  %v2965_v48 = vld [vmem:[%s3032_s8] ss:$0 sm:$0xff] }
0x13bf   :  { %2354 = vpow2.f32 %v1873_v21 }
0x13c0   :  { %2356 = vpow2.f32 %v1871_v51 }
0x13c8   :  { %v2353_v50 = vpop.eup %2352 }
0x13c9   :  { %1383 = vrot.lane.b32.xlu1 %v2353_v50, %s2408_s1  ;;  %v2355_v52 = vpop.eup %2354 }
0x13ca   :  { %v1441_v53 = vadd.f32 1.0, %v2355_v52  ;;  %v2357_v54 = vpop.eup %2356 }
0x13cb   :  { %v1377_v56 = vadd.f32 1.0, %v2357_v54 }
0x13cc   :  { %2358 = vrcp.f32 %v1441_v53 }
0x13cd   :  { %2360 = vrcp.f32 %v1377_v56 }
0x13d6   :  { %v2359_v58 = vpop.eup %2358 }
0x13d7   :  { %v2361_v59 = vpop.eup %2360  ;;  %v1445_v33 = vmul.f32 %v2359_v58, %v2839_v13 }
0x13d8   :  { %v1381_v23 = vmul.f32 %v2361_v59, %v2843_v25 }
0x142f   :  { %v1448_v34 = vpop.permute.xlu0 %1447 }
0x1430   :  { %v1450_v29 = vmul.f32 %v2359_v58, %v1448_v34 }
0x1432   :  { %1452 = vrot.lane.b32.xlu0 %v1450_v29, %s2412_s4 }
0x143b   :  { %v1384_v60 = vpop.permute.xlu1 %1383 }
0x143c   :  { %v1386_v57 = vmul.f32 %v2361_v59, %v1384_v60 }
0x143e   :  { %1388 = vrot.lane.b32.xlu1 %v1386_v57, %s2412_s4 }
0x14a4   :  { %v1453_v61 = vpop.permute.xlu0 %1452 }
0x14a5   :  { %v1455_v5 = vadd.f32 %v1453_v61, %v1445_v33 }
0x14a7   :  { %2362 = vtanh.f32 %v1455_v5 }
0x14b0   :  { %v1389_v62 = vpop.permute.xlu1 %1388 }
0x14b1   :  { %v2363_v63 = vpop.eup %2362  ;;  %v1391_v3 = vadd.f32 %v1389_v62, %v1381_v23 }
0x14b2   :  { %1458 = vrot.lane.b32.xlu0 %v2363_v63, %s2408_s1 }
0x14b3   :  { %2364 = vtanh.f32 %v1391_v3 }
0x14bd   :  { %v2365_v4 = vpop.eup %2364 }
0x14be   :  { %1394 = vrot.lane.b32.xlu1 %v2365_v4, %s2408_s1 }
0x1524   :  { %v1459_v6 = vpop.permute.xlu0 %1458 }
0x1525   :  { %v1461_v7 = vmul.f32 %v2359_v58, %v1459_v6 }
0x1527   :  { %v1462_v8 = vpack.c.bf16 %v1461_v7, %v1461_v7 }
0x1529   :  { %1464 = vrot.lane.b32.xlu0 %v1462_v8, %s2412_s4 }
0x1530   :  { %v1395_v0 = vpop.permute.xlu1 %1394 }
0x1531   :  { %v1397_v9 = vmul.f32 %v2361_v59, %v1395_v0 }
0x1533   :  { %v1509_v10 = vpack.c.bf16 %v1397_v9, %v1397_v9 }
0x1535   :  { %1511 = vrot.lane.b32.xlu1 %v1509_v10, %s2412_s4 }
0x159b   :  { %v1465_v18 = vpop.permute.xlu0 %1464 }
0x159c   :  { %2163 = vmatmul.mubr.msk.bf16.vlgmr.msra.gmra.mrb[32].mxu0 %vm230_vm2, %v1465_v18 }
0x159d   :  { %2167 = vmatpush3.bf16.msra.mxu0 %v2624_v26  ;;  %2170 = vmatprep.mubr.msk.bf16.mxu0 %vm2410_vm1, %v2409_v16 }
0x159e   :  { %2168 = vmatprep.subr.bf16.mxu0 %v2409_v16 }
0x15a1   :  { %2169 = vmatpush3.bf16.msra.mxu0 %v2635_v31 }
0x15a7   :  { %v1512_v12 = vpop.permute.xlu1 %1511 }
0x15a8   :  { %2171 = vmatmul.mubr.msk.bf16.vlgmr.msra.gmra.mrb[32].mxu0 %vm230_vm2, %v1512_v12 }
0x167b   :  { %v1550_v13 = vpop.f32.mrb[32].mxu0 }
0x167c   :  { %v2212_v17 = vadd.f32 %v2407_v14, %v1550_v13  ;;  %v2172_v24 = vpop.f32.mrb[33].mxu0 }
0x167d   :  { %v1553_v25 = vpop.f32.mrb[34].mxu0 }
0x167e   :  { %2366 = vtanh.f32 %v2212_v17  ;;  %v2173_v26 = vpop.f32.mrb[35].mxu0  ;;  %v1876_v28 = vmul.f32 -1.442695, %v2212_v17 }
0x1680   :  { %2368 = vpow2.f32 %v1876_v28 }
0x1688   :  { %v2367_v27 = vpop.eup %2366 }
0x1689   :  { %1566 = vrot.lane.b32.xlu0 %v2367_v27, %s2408_s1 }
0x168a   :  { %v2369_v16 = vpop.eup %2368 }
0x168b   :  { %v1560_v31 = vadd.f32 1.0, %v2369_v16 }
0x168d   :  { %2370 = vrcp.f32 %v1560_v31 }
0x1697   :  { %v2371_v19 = vpop.eup %2370 }
0x16fb   :  { %v1567_v30 = vpop.permute.xlu0 %1566 }
0x16fc   :  { %v1569_v32 = vmul.f32 %v2371_v19, %v1567_v30 }
0x16fe   :  { %1571 = vrot.lane.b32.xlu1 %v1569_v32, %s2412_s4 }
0x1702   :  { %1589 = vrot.lane.b32.xlu1 %v2575_v2, %s2412_s4  ;;  %v1623_v2 = vld [vmem:[%s3030_s7 + $0x10] sm:$0xff] }
0x1706   :  { %1593 = vrot.lane.b32.xlu1 %v2717_v1, %s2412_s4  ;;  %v1624_v1 = vld [vmem:[%s3030_s7 + $0x18] sm:$0xff] }
0x1707   :  { %v2202_v39 = vpack.c.bf16 %v1624_v1, %v1623_v2 }
0x1709   :  { %2203 = vmatprep.subr.bf16.mxu1 %v2202_v39 }
0x170a   :  { %1597 = vrot.lane.b32.xlu1 %v2805_v46, %s2412_s4  ;;  %v1564_v46 = vmul.f32 %v2371_v19, %v1391_v3  ;;  %2205 = vmatpush3.bf16.msra.mxu1 %v2202_v39 }
0x170e   :  { %1601 = vrot.lane.b32.xlu1 %v1397_v9, %s2412_s4 }
0x1770   :  { %v1572_v20 = vpop.permute.xlu1 %1571 }
0x1771   :  { %v1574_v40 = vadd.f32 %v1572_v20, %v1564_v46 }
0x1773   :  { %2372 = vtanh.f32 %v1574_v40 }
0x1774   :  { %v1590_v15 = vpop.permute.xlu1 %1589 }
0x1775   :  { %1613 = vst.msk [vmem:[%s3031_s9] sm:$0xff] %vm230_vm2, %v1590_v15  ;;  %2182 = vmatprep.mubr.msk.f32.mxu1 %vm230_vm2, %v1590_v15 }
0x1778   :  { %v1594_v41 = vpop.permute.xlu1 %1593 }
0x1779   :  { %1615 = vst.msk [vmem:[%s3031_s9 + $0x10] sm:$0xff] %vm230_vm2, %v1594_v41 }
0x177c   :  { %v1598_v42 = vpop.permute.xlu1 %1597 }
0x177d   :  { %v2373_v43 = vpop.eup %2372  ;;  %1617 = vst.msk [vmem:[%s3031_s9 + $0x20] sm:$0xff] %vm230_vm2, %v1598_v42 }
0x177e   :  { %1577 = vrot.lane.b32.xlu0 %v2373_v43, %s2408_s1 }
0x1780   :  { %v1602_v44 = vpop.permute.xlu1 %1601 }
0x1781   :  { %1619 = vst.msk [vmem:[%s3031_s9 + $0x30] sm:$0xff] %vm230_vm2, %v1602_v44 }
0x1782   :  { %1591 = vrot.lane.b32.xlu0 %v2673_v11, %s2412_s4 }
0x1786   :  { %1595 = vrot.lane.b32.xlu0 %v2761_v55, %s2412_s4 }
0x178a   :  { %1599 = vrot.lane.b32.xlu0 %v2849_v35, %s2412_s4 }
0x17f0   :  { %v1578_v45 = vpop.permute.xlu0 %1577 }
0x17f1   :  { %v1580_v22 = vmul.f32 %v2371_v19, %v1578_v45 }
0x17f3   :  { %1603 = vrot.lane.b32.xlu0 %v1580_v22, %s2412_s4 }
0x17f4   :  { %v1592_v47 = vpop.permute.xlu0 %1591 }
0x17f5   :  { %1614 = vst.msk [vmem:[%s3031_s9 + $0x8] sm:$0xff] %vm230_vm2, %v1592_v47  ;;  %2183 = vmatmul.mubr.msk.f32.vlgmr.msra.gmra.mrb[32].mxu1 %vm230_vm2, %v1592_v47 }
0x17f6   :  { %2185 = vmatprep.mubr.msk.f32.mxu1 %vm230_vm2, %v1594_v41 }
0x17f8   :  { %v1596_v11 = vpop.permute.xlu0 %1595 }
0x17f9   :  { %1616 = vst.msk [vmem:[%s3031_s9 + $0x18] sm:$0xff] %vm230_vm2, %v1596_v11  ;;  %2186 = vmatmul.mubr.msk.f32.gmra.mrb[34].mxu1 %vm230_vm2, %v1596_v11 }
0x17fa   :  { %2188 = vmatprep.mubr.msk.f32.mxu1 %vm230_vm2, %v1598_v42 }
0x17fc   :  { %v1600_v55 = vpop.permute.xlu0 %1599 }
0x17fd   :  { %1618 = vst.msk [vmem:[%s3031_s9 + $0x28] sm:$0xff] %vm230_vm2, %v1600_v55  ;;  %2189 = vmatmul.mubr.msk.f32.gmra.mrb[36].mxu1 %vm230_vm2, %v1600_v55 }
0x17fe   :  { %2191 = vmatprep.mubr.msk.f32.mxu1 %vm230_vm2, %v1602_v44 }
0x1865   :  { %v1604_v35 = vpop.permute.xlu0 %1603 }
0x1866   :  { %1620 = vst.msk [vmem:[%s3031_s9 + $0x38] sm:$0xff] %vm230_vm2, %v1604_v35  ;;  %2192 = vmatmul.mubr.msk.f32.gmra.mrb[38].mxu1 %vm230_vm2, %v1604_v35 }
0x18c8   :  { %v2184_v49 = vpop.f32.mrb[32].mxu1 }
0x18c9   :  { %v1720_v50 = vadd.f32 %v2184_v49, %v2965_v48  ;;  %v1714_v21 = vpop.f32.mrb[33].mxu1 }
0x18ca   :  { %v1715_v51 = vadd.f32 %v2965_v48, %v1714_v21 }
0x18cb   :  { %1754 = vst [vmem:[%s3033_s10 + $0x8] sm:$0xff] %v1720_v50  ;;  %v1887_v52 = vmul.f32 -1.442695, %v1720_v50 }
0x18cc   :  { %1753 = vst [vmem:[%s3033_s10] sm:$0xff] %v1715_v51  ;;  %v1886_v53 = vmul.f32 -1.442695, %v1715_v51  ;;  %v2187_v54 = vpop.f32.mrb[34].mxu1 }
0x18cd   :  { %2374 = vpow2.f32 %v1887_v52  ;;  %v1730_v56 = vadd.f32 %v2187_v54, %v2965_v48  ;;  %v1724_v58 = vpop.f32.mrb[35].mxu1 }
0x18ce   :  { %2376 = vpow2.f32 %v1886_v53  ;;  %v1725_v34 = vadd.f32 %v2965_v48, %v1724_v58 }
0x18cf   :  { %1756 = vst [vmem:[%s3033_s10 + $0x18] sm:$0xff] %v1730_v56  ;;  %v1889_v29 = vmul.f32 -1.442695, %v1730_v56 }
0x18d0   :  { %1755 = vst [vmem:[%s3033_s10 + $0x10] sm:$0xff] %v1725_v34  ;;  %v1888_v59 = vmul.f32 -1.442695, %v1725_v34  ;;  %v2190_v60 = vpop.f32.mrb[36].mxu1 }
0x18d1   :  { %2378 = vpow2.f32 %v1889_v29  ;;  %v1740_v57 = vadd.f32 %v2190_v60, %v2965_v48  ;;  %v1734_v33 = vpop.f32.mrb[37].mxu1 }
0x18d2   :  { %2380 = vpow2.f32 %v1888_v59  ;;  %v1735_v61 = vadd.f32 %v2965_v48, %v1734_v33 }
0x18d3   :  { %1758 = vst [vmem:[%s3033_s10 + $0x28] sm:$0xff] %v1740_v57  ;;  %v1891_v5 = vmul.f32 -1.442695, %v1740_v57 }
0x18d4   :  { %1757 = vst [vmem:[%s3033_s10 + $0x20] sm:$0xff] %v1735_v61  ;;  %v1890_v23 = vmul.f32 -1.442695, %v1735_v61 }
0x18d5   :  { %2382 = vpow2.f32 %v1891_v5 }
0x18d6   :  { %2384 = vpow2.f32 %v1890_v23 }
0x18d7   :  { %v2375_v62 = vpop.eup %2374 }
0x18d8   :  { %v2377_v63 = vpop.eup %2376  ;;  %v1786_v3 = vadd.f32 1.0, %v2375_v62 }
0x18d9   :  { %v1785_v4 = vadd.f32 1.0, %v2377_v63 }
0x18da   :  { %2386 = vrcp.f32 %v1786_v3 }
0x18db   :  { %v2379_v6 = vpop.eup %2378  ;;  %2388 = vrcp.f32 %v1785_v4 }
0x18dc   :  { %v2381_v7 = vpop.eup %2380  ;;  %v1788_v8 = vadd.f32 1.0, %v2379_v6 }
0x18dd   :  { %v1787_v0 = vadd.f32 1.0, %v2381_v7 }
0x18de   :  { %2390 = vrcp.f32 %v1788_v8 }
0x18df   :  { %v2383_v9 = vpop.eup %2382  ;;  %2392 = vrcp.f32 %v1787_v0 }
0x18e0   :  { %v2385_v10 = vpop.eup %2384  ;;  %v1790_v18 = vadd.f32 1.0, %v2383_v9 }
0x18e1   :  { %v1789_v12 = vadd.f32 1.0, %v2385_v10 }
0x18e2   :  { %2394 = vrcp.f32 %v1790_v18 }
0x18e3   :  { %2396 = vrcp.f32 %v1789_v12 }
0x18e4   :  { %v2387_v13 = vpop.eup %2386 }
0x18e5   :  { %v2389_v14 = vpop.eup %2388  ;;  %1810 = vst [vmem:[%s3034_s11 + $0x8] sm:$0xff] %v2387_v13 }
0x18e6   :  { %1809 = vst [vmem:[%s3034_s11] sm:$0xff] %v2389_v14 }
0x18e8   :  { %v2391_v17 = vpop.eup %2390 }
0x18e9   :  { %v2393_v24 = vpop.eup %2392  ;;  %1812 = vst [vmem:[%s3034_s11 + $0x18] sm:$0xff] %v2391_v17 }
0x18ea   :  { %1811 = vst [vmem:[%s3034_s11 + $0x10] sm:$0xff] %v2393_v24 }
0x18ec   :  { %v2395_v25 = vpop.eup %2394 }
0x18ed   :  { %v2397_v26 = vpop.eup %2396  ;;  %1814 = vst [vmem:[%s3034_s11 + $0x28] sm:$0xff] %v2395_v25 }
0x18ee   :  { %1813 = vst [vmem:[%s3034_s11 + $0x20] sm:$0xff] %v2397_v26 }
0x1939   :  { %v2193_v27 = vpop.f32.mrb[38].mxu1 }
0x193a   :  { %v1750_v28 = vadd.f32 %v2193_v27, %v2965_v48  ;;  %v1744_v16 = vpop.f32.mrb[39].mxu1 }
0x193b   :  { %v1745_v31 = vadd.f32 %v2965_v48, %v1744_v16 }
0x193c   :  { %1760 = vst [vmem:[%s3033_s10 + $0x38] sm:$0xff] %v1750_v28  ;;  %v1893_v19 = vmul.f32 -1.442695, %v1750_v28 }
0x193d   :  { %1759 = vst [vmem:[%s3033_s10 + $0x30] sm:$0xff] %v1745_v31  ;;  %v1892_v30 = vmul.f32 -1.442695, %v1745_v31 }
0x193e   :  { %2398 = vpow2.f32 %v1893_v19 }
0x193f   :  { %2400 = vpow2.f32 %v1892_v30 }
0x1948   :  { %v2399_v32 = vpop.eup %2398 }
0x1949   :  { %v2401_v36 = vpop.eup %2400  ;;  %v1792_v37 = vadd.f32 1.0, %v2399_v32 }
0x194a   :  { %v1791_v38 = vadd.f32 1.0, %v2401_v36 }
0x194b   :  { %2402 = vrcp.f32 %v1792_v37 }
0x194c   :  { %2404 = vrcp.f32 %v1791_v38 }
0x1955   :  { %v2403_v2 = vpop.eup %2402 }
0x1956   :  { %v2405_v1 = vpop.eup %2404  ;;  %1816 = vst [vmem:[%s3034_s11 + $0x38] sm:$0xff] %v2403_v2 }
0x1957   :  { %1815 = vst [vmem:[%s3034_s11 + $0x30] sm:$0xff] %v2405_v1 }

</bundles_post_ra>
